<compile_context>
chip_gen: v7x
topology: tpu7x:2x2x1
jax: 0.10.0
libtpu: 0.0.40
codegen_flags: <defaults>
</compile_context>

<pallas_src>
import functools

import numpy as np

import jax
import jax.numpy as jnp
from jax.experimental import pallas as pl
from jax.experimental.pallas import tpu as pltpu


_CONV_NAMES = ("1", "2a", "2b", "3a", "3b", "3c", "4")


# ---------------------------------------------------------------------------
# Fused Inception-block kernel (one batch element per grid step).
#   x_ref   : (Cin, HW)  bf16
#   msk_ref : (9, HW)    f32, 0/1 validity of each 3x3 tap ((dy,dx) row-major)
#   w*_ref  : (Cout, K)  bf16 (BN already folded in), c*_ref: (Cout, 1) f32
#   out_ref : (Ctot, HW) f32  (channel concat of the four branches)
# ---------------------------------------------------------------------------
def _inception_kernel(x_ref, msk_ref,
                      w1_ref, c1_ref,
                      w2a_ref, c2a_ref, w2b_ref, c2b_ref,
                      w3a_ref, c3a_ref, w3b_ref, c3b_ref, w3c_ref, c3c_ref,
                      w4_ref, c4_ref,
                      out_ref, *, width):
    M = x_ref.shape[-1]
    xb = x_ref[...]                          # (Cin, M) bf16 -> MXU operand
    x32 = xb.astype(jnp.float32)             # f32 copy for shifts / pooling

    # (1, M) 0/1 masks, one per 3x3 tap, row-major (dy, dx) order.
    mrows = [msk_ref[t:t + 1, :] for t in range(9)]
    offs = tuple((dy, dx) for dy in (-1, 0, 1) for dx in (-1, 0, 1))

    def shifted(v, t):
        # Flattened-index shift by dy*W + dx (wrap-around is masked out).
        dy, dx = offs[t]
        s = (-(dy * width + dx)) % M
        return pltpu.roll(v, shift=s, axis=1) if s else v

    def im2col(v):
        # v: (C, M) f32 -> masked 3x3 patches (9*C, M) bf16 for one big matmul.
        parts = [shifted(v, t) * mrows[t] for t in range(9)]
        return jnp.concatenate(parts, axis=0).astype(jnp.bfloat16)

    def cbr(w_ref, c_ref, v):
        # relu(W @ v + b): W (Cout, K) bf16, v (K, M) bf16 -> (Cout, M) f32.
        z = jnp.dot(w_ref[...], v, preferred_element_type=jnp.float32)
        return jnp.maximum(z + c_ref[...], 0.0)

    # Branch 1: 1x1 conv.
    y1 = cbr(w1_ref, c1_ref, xb)
    # Branch 2: 1x1 conv -> 3x3 conv.
    y2 = cbr(w2b_ref, c2b_ref, im2col(cbr(w2a_ref, c2a_ref, xb)))
    # Branch 3: 1x1 conv -> 3x3 conv -> 3x3 conv.
    h3 = cbr(w3a_ref, c3a_ref, xb)
    h3 = cbr(w3b_ref, c3b_ref, im2col(h3))
    y3 = cbr(w3c_ref, c3c_ref, im2col(h3))
    # Branch 4: 3x3 max-pool (stride 1, pad 1) -> 1x1 conv.
    big = 3.0e38   # out-of-bounds pool taps become -3e38 (never win the max)
    pooled = x32   # center tap, always valid
    for t in range(9):
        if t == 4:
            continue
        tap = shifted(x32, t) * mrows[t] + (mrows[t] - 1.0) * big
        pooled = jnp.maximum(pooled, tap)
    y4 = cbr(w4_ref, c4_ref, pooled.astype(jnp.bfloat16))

    # Channel concat == write each branch into its slice of the output block
    # (all offsets are sublane-aligned for multiple-of-8 channel counts).
    n1, n2, n3 = y1.shape[0], y2.shape[0], y3.shape[0]
    n4 = y4.shape[0]
    out_ref[0:n1, :] = y1
    out_ref[n1:n1 + n2, :] = y2
    out_ref[n1 + n2:n1 + n2 + n3, :] = y3
    out_ref[n1 + n2 + n3:n1 + n2 + n3 + n4, :] = y4


# ---------------------------------------------------------------------------
# Wrapper: layout glue + pallas_call.
# ---------------------------------------------------------------------------
def _inception_forward(x_nchw, packed):
    B, cin, H, W = x_nchw.shape
    HW = H * W
    ctot = sum(packed["w" + n].shape[0] for n in ("1", "2b", "3c", "4"))

    xf = x_nchw.reshape(B, cin, HW).astype(jnp.bfloat16)

    # 3x3-neighbourhood validity masks (1.0 = in-bounds tap, 0.0 = padding).
    m = np.arange(HW)
    hh, ww = m // W, m % W
    masks = np.stack(
        [((hh + dy >= 0) & (hh + dy < H) & (ww + dx >= 0) & (ww + dx < W))
         for dy in (-1, 0, 1) for dx in (-1, 0, 1)]).astype(np.float32)
    masks = jnp.asarray(masks)                               # (9, HW)

    weight_args, weight_specs = [], []
    for name in _CONV_NAMES:
        for p in ("w" + name, "b" + name):
            arr = packed[p]
            weight_args.append(arr)
            weight_specs.append(pl.BlockSpec(arr.shape, lambda b: (0, 0)))

    out = pl.pallas_call(
        functools.partial(_inception_kernel, width=W),
        out_shape=jax.ShapeDtypeStruct((B, ctot, HW), jnp.float32),
        grid=(B,),
        in_specs=[pl.BlockSpec((None, cin, HW), lambda b: (b, 0, 0)),
                  pl.BlockSpec((9, HW), lambda b: (0, 0))] + weight_specs,
        out_specs=pl.BlockSpec((None, ctot, HW), lambda b: (b, 0, 0)),
        compiler_params=pltpu.CompilerParams(
            dimension_semantics=("parallel",)),
    )(xf, masks, *weight_args)
    return out.reshape(B, ctot, H, W)


inception_forward = jax.jit(_inception_forward)


# ---------------------------------------------------------------------------
# Parameters: synthetic conv + BatchNorm params, BN folded (inference mode).
# ---------------------------------------------------------------------------
def init_inception_params(key, in_planes, n1x1, n3x3red, n3x3, n5x5red, n5x5,
                          pool_planes, eps=1e-5):
    layer_shapes = {
        "1": (in_planes, n1x1, 1),
        "2a": (in_planes, n3x3red, 1),
        "2b": (n3x3red, n3x3, 3),
        "3a": (in_planes, n5x5red, 1),
        "3b": (n5x5red, n5x5, 3),
        "3c": (n5x5, n5x5, 3),
        "4": (in_planes, pool_planes, 1),
    }
    folded = {}
    keys = jax.random.split(key, len(layer_shapes))
    for lk, (name, (cin, cout, ks)) in zip(keys, layer_shapes.items()):
        k_w, k_b, k_g, k_bt, k_m, k_v = jax.random.split(lk, 6)
        w = 0.1 * jax.random.normal(k_w, (cout, cin, ks, ks), jnp.float32)
        b = 0.05 * jax.random.normal(k_b, (cout,), jnp.float32)
        gamma = 1.0 + 0.1 * jax.random.normal(k_g, (cout,), jnp.float32)
        beta = 0.1 * jax.random.normal(k_bt, (cout,), jnp.float32)
        mean = 0.1 * jax.random.normal(k_m, (cout,), jnp.float32)
        var = jax.random.uniform(k_v, (cout,), jnp.float32, 0.5, 1.5)
        scale = gamma / jnp.sqrt(var + eps)
        folded["w" + name] = w * scale[:, None, None, None]   # (Cout,Cin,k,k)
        folded["b" + name] = (b - mean) * scale + beta        # (Cout,)
    return folded


def pack_params_for_kernel(folded):
    """One-time repack to kernel layout: (Cout, K) bf16 weights, (Cout,1) f32 bias."""
    packed = {}
    for name in _CONV_NAMES:
        w = folded["w" + name]
        b = folded["b" + name]
        cout, cin, kh, kw = w.shape
        if kh == 1:
            wk = w.reshape(cout, cin)
        else:
            # Tap-major ((dy,dx) row-major, then channel) to match in-kernel im2col.
            wk = jnp.transpose(w, (0, 2, 3, 1)).reshape(cout, kh * kw * cin)
        packed["w" + name] = wk.astype(jnp.bfloat16)
        packed["b" + name] = b.reshape(cout, 1).astype(jnp.float32)
    return packed


# ---------------------------------------------------------------------------
# Pure-JAX reference (same folded weights) for a correctness check.
# ---------------------------------------------------------------------------
def inception_reference(x, folded):
    def cbr(v, w, b):
        pad = (w.shape[-1] - 1) // 2
        y = jax.lax.conv_general_dilated(
            v, w, window_strides=(1, 1), padding=[(pad, pad), (pad, pad)],
            dimension_numbers=("NCHW", "OIHW", "NCHW"))
        return jnp.maximum(y + b[None, :, None, None], 0.0)

    y1 = cbr(x, folded["w1"], folded["b1"])
    y2 = cbr(cbr(x, folded["w2a"], folded["b2a"]), folded["w2b"], folded["b2b"])
    y3 = cbr(cbr(cbr(x, folded["w3a"], folded["b3a"]),
                 folded["w3b"], folded["b3b"]),
             folded["w3c"], folded["b3c"])
    xp = jax.lax.reduce_window(
        x, -jnp.inf, jax.lax.max, (1, 1, 3, 3), (1, 1, 1, 1),
        padding=((0, 0), (0, 0), (1, 1), (1, 1)))
    y4 = cbr(xp, folded["w4"], folded["b4"])
    return jnp.concatenate([y1, y2, y3, y4], axis=1)


if __name__ == "__main__":
    B, C, H, W = 2, 16, 16, 16
    x = jax.random.normal(jax.random.PRNGKey(0), (B, C, H, W), jnp.float32)

    folded = init_inception_params(
        jax.random.PRNGKey(42), in_planes=C,
        n1x1=16, n3x3red=16, n3x3=32, n5x5red=8, n5x5=16, pool_planes=16)
    packed = pack_params_for_kernel(folded)

    out = inception_forward(x, packed)
    jax.block_until_ready(out)
    assert out.shape == (B, 16 + 32 + 16 + 16, H, W)
    assert out.dtype == jnp.float32

    ref = inception_reference(x, folded)
    err = float(jnp.max(jnp.abs(out - ref)))
    assert jnp.allclose(out, ref, rtol=1e-1, atol=1e-1), f"max |err| = {err}"
    print("KERNEL_OK")
</pallas_src>

<mosaic_0001>
module attributes {stable_mosaic.version = 11 : i64} {
  func.func @_inception_kernel(%arg0: i32, %arg1: memref<1x16x256xbf16, #tpu.memory_space<vmem>>, %arg2: memref<9x256xf32, #tpu.memory_space<vmem>>, %arg3: memref<16x16xbf16, #tpu.memory_space<vmem>>, %arg4: memref<16x1xf32, #tpu.memory_space<vmem>>, %arg5: memref<16x16xbf16, #tpu.memory_space<vmem>>, %arg6: memref<16x1xf32, #tpu.memory_space<vmem>>, %arg7: memref<32x144xbf16, #tpu.memory_space<vmem>>, %arg8: memref<32x1xf32, #tpu.memory_space<vmem>>, %arg9: memref<8x16xbf16, #tpu.memory_space<vmem>>, %arg10: memref<8x1xf32, #tpu.memory_space<vmem>>, %arg11: memref<16x72xbf16, #tpu.memory_space<vmem>>, %arg12: memref<16x1xf32, #tpu.memory_space<vmem>>, %arg13: memref<16x144xbf16, #tpu.memory_space<vmem>>, %arg14: memref<16x1xf32, #tpu.memory_space<vmem>>, %arg15: memref<16x16xbf16, #tpu.memory_space<vmem>>, %arg16: memref<16x1xf32, #tpu.memory_space<vmem>>, %arg17: memref<1x80x256xf32, #tpu.memory_space<vmem>>) attributes {dimension_semantics = [#tpu.dimension_semantics<parallel>], iteration_bounds = array<i64: 2>, scalar_prefetch = 0 : i64, scratch_operands = 0 : i64, tpu.core_type = #tpu.core_type<tc>, window_params = [{transform_indices = @transform_0, window_bounds = array<i64: 1, 16, 256>}, {pipeline_mode = #tpu.pipeline_mode<synchronous>, transform_indices = @transform_1, window_bounds = array<i64: 9, 256>}, {pipeline_mode = #tpu.pipeline_mode<synchronous>, transform_indices = @transform_2, window_bounds = array<i64: 16, 16>}, {pipeline_mode = #tpu.pipeline_mode<synchronous>, transform_indices = @transform_3, window_bounds = array<i64: 16, 1>}, {pipeline_mode = #tpu.pipeline_mode<synchronous>, transform_indices = @transform_4, window_bounds = array<i64: 16, 16>}, {pipeline_mode = #tpu.pipeline_mode<synchronous>, transform_indices = @transform_5, window_bounds = array<i64: 16, 1>}, {pipeline_mode = #tpu.pipeline_mode<synchronous>, transform_indices = @transform_6, window_bounds = array<i64: 32, 144>}, {pipeline_mode = #tpu.pipeline_mode<synchronous>, transform_indices = @transform_7, window_bounds = array<i64: 32, 1>}, {pipeline_mode = #tpu.pipeline_mode<synchronous>, transform_indices = @transform_8, window_bounds = array<i64: 8, 16>}, {pipeline_mode = #tpu.pipeline_mode<synchronous>, transform_indices = @transform_9, window_bounds = array<i64: 8, 1>}, {pipeline_mode = #tpu.pipeline_mode<synchronous>, transform_indices = @transform_10, window_bounds = array<i64: 16, 72>}, {pipeline_mode = #tpu.pipeline_mode<synchronous>, transform_indices = @transform_11, window_bounds = array<i64: 16, 1>}, {pipeline_mode = #tpu.pipeline_mode<synchronous>, transform_indices = @transform_12, window_bounds = array<i64: 16, 144>}, {pipeline_mode = #tpu.pipeline_mode<synchronous>, transform_indices = @transform_13, window_bounds = array<i64: 16, 1>}, {pipeline_mode = #tpu.pipeline_mode<synchronous>, transform_indices = @transform_14, window_bounds = array<i64: 16, 16>}, {pipeline_mode = #tpu.pipeline_mode<synchronous>, transform_indices = @transform_15, window_bounds = array<i64: 16, 1>}, {transform_indices = @transform_16, window_bounds = array<i64: 1, 80, 256>}]} {
    %c0 = arith.constant 0 : index
    %c0_0 = arith.constant 0 : index
    %c0_1 = arith.constant 0 : index
    %0 = vector.load %arg1[%c0, %c0_0, %c0_1] : memref<1x16x256xbf16, #tpu.memory_space<vmem>>, vector<1x16x256xbf16>
    %1 = vector.shape_cast %0 : vector<1x16x256xbf16> to vector<16x256xbf16>
    %2 = arith.extf %1 : vector<16x256xbf16> to vector<16x256xf32>
    %c0_2 = arith.constant 0 : index
    %c0_3 = arith.constant 0 : index
    %3 = vector.load %arg2[%c0_2, %c0_3] : memref<9x256xf32, #tpu.memory_space<vmem>>, vector<1x256xf32>
    %c1 = arith.constant 1 : index
    %c0_4 = arith.constant 0 : index
    %4 = vector.load %arg2[%c1, %c0_4] : memref<9x256xf32, #tpu.memory_space<vmem>>, vector<1x256xf32>
    %c2 = arith.constant 2 : index
    %c0_5 = arith.constant 0 : index
    %5 = vector.load %arg2[%c2, %c0_5] : memref<9x256xf32, #tpu.memory_space<vmem>>, vector<1x256xf32>
    %c3 = arith.constant 3 : index
    %c0_6 = arith.constant 0 : index
    %6 = vector.load %arg2[%c3, %c0_6] : memref<9x256xf32, #tpu.memory_space<vmem>>, vector<1x256xf32>
    %c4 = arith.constant 4 : index
    %c0_7 = arith.constant 0 : index
    %7 = vector.load %arg2[%c4, %c0_7] : memref<9x256xf32, #tpu.memory_space<vmem>>, vector<1x256xf32>
    %c5 = arith.constant 5 : index
    %c0_8 = arith.constant 0 : index
    %8 = vector.load %arg2[%c5, %c0_8] : memref<9x256xf32, #tpu.memory_space<vmem>>, vector<1x256xf32>
    %c6 = arith.constant 6 : index
    %c0_9 = arith.constant 0 : index
    %9 = vector.load %arg2[%c6, %c0_9] : memref<9x256xf32, #tpu.memory_space<vmem>>, vector<1x256xf32>
    %c7 = arith.constant 7 : index
    %c0_10 = arith.constant 0 : index
    %10 = vector.load %arg2[%c7, %c0_10] : memref<9x256xf32, #tpu.memory_space<vmem>>, vector<1x256xf32>
    %c8 = arith.constant 8 : index
    %c0_11 = arith.constant 0 : index
    %11 = vector.load %arg2[%c8, %c0_11] : memref<9x256xf32, #tpu.memory_space<vmem>>, vector<1x256xf32>
    %c0_12 = arith.constant 0 : index
    %c0_13 = arith.constant 0 : index
    %12 = vector.load %arg3[%c0_12, %c0_13] : memref<16x16xbf16, #tpu.memory_space<vmem>>, vector<16x16xbf16>
    %cst = arith.constant dense<0.000000e+00> : vector<16x256xf32>
    %13 = tpu.matmul %12, %1, %cst {dimension_numbers = #tpu.dot_dimension_numbers<[1], [0], [0], [1], [0, 0, 1, 1], [], []>} : vector<16x16xbf16>, vector<16x256xbf16>, vector<16x256xf32> -> vector<16x256xf32>
    %c0_14 = arith.constant 0 : index
    %c0_15 = arith.constant 0 : index
    %14 = vector.load %arg4[%c0_14, %c0_15] : memref<16x1xf32, #tpu.memory_space<vmem>>, vector<16x1xf32>
    %15 = vector.broadcast %14 : vector<16x1xf32> to vector<16x256xf32>
    %16 = arith.addf %13, %15 : vector<16x256xf32>
    %cst_16 = arith.constant 0.000000e+00 : f32
    %17 = vector.broadcast %cst_16 : f32 to vector<16x256xf32>
    %18 = arith.maximumf %16, %17 : vector<16x256xf32>
    %c0_17 = arith.constant 0 : index
    %c0_18 = arith.constant 0 : index
    %19 = vector.load %arg5[%c0_17, %c0_18] : memref<16x16xbf16, #tpu.memory_space<vmem>>, vector<16x16xbf16>
    %cst_19 = arith.constant dense<0.000000e+00> : vector<16x256xf32>
    %20 = tpu.matmul %19, %1, %cst_19 {dimension_numbers = #tpu.dot_dimension_numbers<[1], [0], [0], [1], [0, 0, 1, 1], [], []>} : vector<16x16xbf16>, vector<16x256xbf16>, vector<16x256xf32> -> vector<16x256xf32>
    %c0_20 = arith.constant 0 : index
    %c0_21 = arith.constant 0 : index
    %21 = vector.load %arg6[%c0_20, %c0_21] : memref<16x1xf32, #tpu.memory_space<vmem>>, vector<16x1xf32>
    %22 = vector.broadcast %21 : vector<16x1xf32> to vector<16x256xf32>
    %23 = arith.addf %20, %22 : vector<16x256xf32>
    %cst_22 = arith.constant 0.000000e+00 : f32
    %24 = vector.broadcast %cst_22 : f32 to vector<16x256xf32>
    %25 = arith.maximumf %23, %24 : vector<16x256xf32>
    %c17_i32 = arith.constant 17 : i32
    %26 = tpu.dynamic_rotate %25 by %c17_i32 dim 1 : vector<16x256xf32>, i32 -> vector<16x256xf32>
    %27 = vector.broadcast %3 : vector<1x256xf32> to vector<16x256xf32>
    %28 = arith.mulf %26, %27 : vector<16x256xf32>
    %c16_i32 = arith.constant 16 : i32
    %29 = tpu.dynamic_rotate %25 by %c16_i32 dim 1 : vector<16x256xf32>, i32 -> vector<16x256xf32>
    %30 = vector.broadcast %4 : vector<1x256xf32> to vector<16x256xf32>
    %31 = arith.mulf %29, %30 : vector<16x256xf32>
    %c15_i32 = arith.constant 15 : i32
    %32 = tpu.dynamic_rotate %25 by %c15_i32 dim 1 : vector<16x256xf32>, i32 -> vector<16x256xf32>
    %33 = vector.broadcast %5 : vector<1x256xf32> to vector<16x256xf32>
    %34 = arith.mulf %32, %33 : vector<16x256xf32>
    %c1_i32 = arith.constant 1 : i32
    %35 = tpu.dynamic_rotate %25 by %c1_i32 dim 1 : vector<16x256xf32>, i32 -> vector<16x256xf32>
    %36 = vector.broadcast %6 : vector<1x256xf32> to vector<16x256xf32>
    %37 = arith.mulf %35, %36 : vector<16x256xf32>
    %38 = vector.broadcast %7 : vector<1x256xf32> to vector<16x256xf32>
    %39 = arith.mulf %25, %38 : vector<16x256xf32>
    %c255_i32 = arith.constant 255 : i32
    %40 = tpu.dynamic_rotate %25 by %c255_i32 dim 1 : vector<16x256xf32>, i32 -> vector<16x256xf32>
    %41 = vector.broadcast %8 : vector<1x256xf32> to vector<16x256xf32>
    %42 = arith.mulf %40, %41 : vector<16x256xf32>
    %c241_i32 = arith.constant 241 : i32
    %43 = tpu.dynamic_rotate %25 by %c241_i32 dim 1 : vector<16x256xf32>, i32 -> vector<16x256xf32>
    %44 = vector.broadcast %9 : vector<1x256xf32> to vector<16x256xf32>
    %45 = arith.mulf %43, %44 : vector<16x256xf32>
    %c240_i32 = arith.constant 240 : i32
    %46 = tpu.dynamic_rotate %25 by %c240_i32 dim 1 : vector<16x256xf32>, i32 -> vector<16x256xf32>
    %47 = vector.broadcast %10 : vector<1x256xf32> to vector<16x256xf32>
    %48 = arith.mulf %46, %47 : vector<16x256xf32>
    %c239_i32 = arith.constant 239 : i32
    %49 = tpu.dynamic_rotate %25 by %c239_i32 dim 1 : vector<16x256xf32>, i32 -> vector<16x256xf32>
    %50 = vector.broadcast %11 : vector<1x256xf32> to vector<16x256xf32>
    %51 = arith.mulf %49, %50 : vector<16x256xf32>
    %52 = tpu.concatenate %28, %31, %34, %37, %39, %42, %45, %48, %51 in 0 : vector<16x256xf32>, vector<16x256xf32>, vector<16x256xf32>, vector<16x256xf32>, vector<16x256xf32>, vector<16x256xf32>, vector<16x256xf32>, vector<16x256xf32>, vector<16x256xf32> -> vector<144x256xf32>
    %53 = arith.truncf %52 : vector<144x256xf32> to vector<144x256xbf16>
    %c0_23 = arith.constant 0 : index
    %c0_24 = arith.constant 0 : index
    %54 = vector.load %arg7[%c0_23, %c0_24] : memref<32x144xbf16, #tpu.memory_space<vmem>>, vector<32x144xbf16>
    %cst_25 = arith.constant dense<0.000000e+00> : vector<32x256xf32>
    %55 = tpu.matmul %54, %53, %cst_25 {dimension_numbers = #tpu.dot_dimension_numbers<[1], [0], [0], [1], [0, 0, 1, 1], [], []>} : vector<32x144xbf16>, vector<144x256xbf16>, vector<32x256xf32> -> vector<32x256xf32>
    %c0_26 = arith.constant 0 : index
    %c0_27 = arith.constant 0 : index
    %56 = vector.load %arg8[%c0_26, %c0_27] : memref<32x1xf32, #tpu.memory_space<vmem>>, vector<32x1xf32>
    %57 = vector.broadcast %56 : vector<32x1xf32> to vector<32x256xf32>
    %58 = arith.addf %55, %57 : vector<32x256xf32>
    %cst_28 = arith.constant 0.000000e+00 : f32
    %59 = vector.broadcast %cst_28 : f32 to vector<32x256xf32>
    %60 = arith.maximumf %58, %59 : vector<32x256xf32>
    %c0_29 = arith.constant 0 : index
    %c0_30 = arith.constant 0 : index
    %61 = vector.load %arg9[%c0_29, %c0_30] : memref<8x16xbf16, #tpu.memory_space<vmem>>, vector<8x16xbf16>
    %cst_31 = arith.constant dense<0.000000e+00> : vector<8x256xf32>
    %62 = tpu.matmul %61, %1, %cst_31 {dimension_numbers = #tpu.dot_dimension_numbers<[1], [0], [0], [1], [0, 0, 1, 1], [], []>} : vector<8x16xbf16>, vector<16x256xbf16>, vector<8x256xf32> -> vector<8x256xf32>
    %c0_32 = arith.constant 0 : index
    %c0_33 = arith.constant 0 : index
    %63 = vector.load %arg10[%c0_32, %c0_33] : memref<8x1xf32, #tpu.memory_space<vmem>>, vector<8x1xf32>
    %64 = vector.broadcast %63 : vector<8x1xf32> to vector<8x256xf32>
    %65 = arith.addf %62, %64 : vector<8x256xf32>
    %cst_34 = arith.constant 0.000000e+00 : f32
    %66 = vector.broadcast %cst_34 : f32 to vector<8x256xf32>
    %67 = arith.maximumf %65, %66 : vector<8x256xf32>
    %c17_i32_35 = arith.constant 17 : i32
    %68 = tpu.dynamic_rotate %67 by %c17_i32_35 dim 1 : vector<8x256xf32>, i32 -> vector<8x256xf32>
    %69 = vector.broadcast %3 : vector<1x256xf32> to vector<8x256xf32>
    %70 = arith.mulf %68, %69 : vector<8x256xf32>
    %c16_i32_36 = arith.constant 16 : i32
    %71 = tpu.dynamic_rotate %67 by %c16_i32_36 dim 1 : vector<8x256xf32>, i32 -> vector<8x256xf32>
    %72 = vector.broadcast %4 : vector<1x256xf32> to vector<8x256xf32>
    %73 = arith.mulf %71, %72 : vector<8x256xf32>
    %c15_i32_37 = arith.constant 15 : i32
    %74 = tpu.dynamic_rotate %67 by %c15_i32_37 dim 1 : vector<8x256xf32>, i32 -> vector<8x256xf32>
    %75 = vector.broadcast %5 : vector<1x256xf32> to vector<8x256xf32>
    %76 = arith.mulf %74, %75 : vector<8x256xf32>
    %c1_i32_38 = arith.constant 1 : i32
    %77 = tpu.dynamic_rotate %67 by %c1_i32_38 dim 1 : vector<8x256xf32>, i32 -> vector<8x256xf32>
    %78 = vector.broadcast %6 : vector<1x256xf32> to vector<8x256xf32>
    %79 = arith.mulf %77, %78 : vector<8x256xf32>
    %80 = vector.broadcast %7 : vector<1x256xf32> to vector<8x256xf32>
    %81 = arith.mulf %67, %80 : vector<8x256xf32>
    %c255_i32_39 = arith.constant 255 : i32
    %82 = tpu.dynamic_rotate %67 by %c255_i32_39 dim 1 : vector<8x256xf32>, i32 -> vector<8x256xf32>
    %83 = vector.broadcast %8 : vector<1x256xf32> to vector<8x256xf32>
    %84 = arith.mulf %82, %83 : vector<8x256xf32>
    %c241_i32_40 = arith.constant 241 : i32
    %85 = tpu.dynamic_rotate %67 by %c241_i32_40 dim 1 : vector<8x256xf32>, i32 -> vector<8x256xf32>
    %86 = vector.broadcast %9 : vector<1x256xf32> to vector<8x256xf32>
    %87 = arith.mulf %85, %86 : vector<8x256xf32>
    %c240_i32_41 = arith.constant 240 : i32
    %88 = tpu.dynamic_rotate %67 by %c240_i32_41 dim 1 : vector<8x256xf32>, i32 -> vector<8x256xf32>
    %89 = vector.broadcast %10 : vector<1x256xf32> to vector<8x256xf32>
    %90 = arith.mulf %88, %89 : vector<8x256xf32>
    %c239_i32_42 = arith.constant 239 : i32
    %91 = tpu.dynamic_rotate %67 by %c239_i32_42 dim 1 : vector<8x256xf32>, i32 -> vector<8x256xf32>
    %92 = vector.broadcast %11 : vector<1x256xf32> to vector<8x256xf32>
    %93 = arith.mulf %91, %92 : vector<8x256xf32>
    %94 = tpu.concatenate %70, %73, %76, %79, %81, %84, %87, %90, %93 in 0 : vector<8x256xf32>, vector<8x256xf32>, vector<8x256xf32>, vector<8x256xf32>, vector<8x256xf32>, vector<8x256xf32>, vector<8x256xf32>, vector<8x256xf32>, vector<8x256xf32> -> vector<72x256xf32>
    %95 = arith.truncf %94 : vector<72x256xf32> to vector<72x256xbf16>
    %c0_43 = arith.constant 0 : index
    %c0_44 = arith.constant 0 : index
    %96 = vector.load %arg11[%c0_43, %c0_44] : memref<16x72xbf16, #tpu.memory_space<vmem>>, vector<16x72xbf16>
    %cst_45 = arith.constant dense<0.000000e+00> : vector<16x256xf32>
    %97 = tpu.matmul %96, %95, %cst_45 {dimension_numbers = #tpu.dot_dimension_numbers<[1], [0], [0], [1], [0, 0, 1, 1], [], []>} : vector<16x72xbf16>, vector<72x256xbf16>, vector<16x256xf32> -> vector<16x256xf32>
    %c0_46 = arith.constant 0 : index
    %c0_47 = arith.constant 0 : index
    %98 = vector.load %arg12[%c0_46, %c0_47] : memref<16x1xf32, #tpu.memory_space<vmem>>, vector<16x1xf32>
    %99 = vector.broadcast %98 : vector<16x1xf32> to vector<16x256xf32>
    %100 = arith.addf %97, %99 : vector<16x256xf32>
    %cst_48 = arith.constant 0.000000e+00 : f32
    %101 = vector.broadcast %cst_48 : f32 to vector<16x256xf32>
    %102 = arith.maximumf %100, %101 : vector<16x256xf32>
    %c17_i32_49 = arith.constant 17 : i32
    %103 = tpu.dynamic_rotate %102 by %c17_i32_49 dim 1 : vector<16x256xf32>, i32 -> vector<16x256xf32>
    %104 = vector.broadcast %3 : vector<1x256xf32> to vector<16x256xf32>
    %105 = arith.mulf %103, %104 : vector<16x256xf32>
    %c16_i32_50 = arith.constant 16 : i32
    %106 = tpu.dynamic_rotate %102 by %c16_i32_50 dim 1 : vector<16x256xf32>, i32 -> vector<16x256xf32>
    %107 = vector.broadcast %4 : vector<1x256xf32> to vector<16x256xf32>
    %108 = arith.mulf %106, %107 : vector<16x256xf32>
    %c15_i32_51 = arith.constant 15 : i32
    %109 = tpu.dynamic_rotate %102 by %c15_i32_51 dim 1 : vector<16x256xf32>, i32 -> vector<16x256xf32>
    %110 = vector.broadcast %5 : vector<1x256xf32> to vector<16x256xf32>
    %111 = arith.mulf %109, %110 : vector<16x256xf32>
    %c1_i32_52 = arith.constant 1 : i32
    %112 = tpu.dynamic_rotate %102 by %c1_i32_52 dim 1 : vector<16x256xf32>, i32 -> vector<16x256xf32>
    %113 = vector.broadcast %6 : vector<1x256xf32> to vector<16x256xf32>
    %114 = arith.mulf %112, %113 : vector<16x256xf32>
    %115 = vector.broadcast %7 : vector<1x256xf32> to vector<16x256xf32>
    %116 = arith.mulf %102, %115 : vector<16x256xf32>
    %c255_i32_53 = arith.constant 255 : i32
    %117 = tpu.dynamic_rotate %102 by %c255_i32_53 dim 1 : vector<16x256xf32>, i32 -> vector<16x256xf32>
    %118 = vector.broadcast %8 : vector<1x256xf32> to vector<16x256xf32>
    %119 = arith.mulf %117, %118 : vector<16x256xf32>
    %c241_i32_54 = arith.constant 241 : i32
    %120 = tpu.dynamic_rotate %102 by %c241_i32_54 dim 1 : vector<16x256xf32>, i32 -> vector<16x256xf32>
    %121 = vector.broadcast %9 : vector<1x256xf32> to vector<16x256xf32>
    %122 = arith.mulf %120, %121 : vector<16x256xf32>
    %c240_i32_55 = arith.constant 240 : i32
    %123 = tpu.dynamic_rotate %102 by %c240_i32_55 dim 1 : vector<16x256xf32>, i32 -> vector<16x256xf32>
    %124 = vector.broadcast %10 : vector<1x256xf32> to vector<16x256xf32>
    %125 = arith.mulf %123, %124 : vector<16x256xf32>
    %c239_i32_56 = arith.constant 239 : i32
    %126 = tpu.dynamic_rotate %102 by %c239_i32_56 dim 1 : vector<16x256xf32>, i32 -> vector<16x256xf32>
    %127 = vector.broadcast %11 : vector<1x256xf32> to vector<16x256xf32>
    %128 = arith.mulf %126, %127 : vector<16x256xf32>
    %129 = tpu.concatenate %105, %108, %111, %114, %116, %119, %122, %125, %128 in 0 : vector<16x256xf32>, vector<16x256xf32>, vector<16x256xf32>, vector<16x256xf32>, vector<16x256xf32>, vector<16x256xf32>, vector<16x256xf32>, vector<16x256xf32>, vector<16x256xf32> -> vector<144x256xf32>
    %130 = arith.truncf %129 : vector<144x256xf32> to vector<144x256xbf16>
    %c0_57 = arith.constant 0 : index
    %c0_58 = arith.constant 0 : index
    %131 = vector.load %arg13[%c0_57, %c0_58] : memref<16x144xbf16, #tpu.memory_space<vmem>>, vector<16x144xbf16>
    %cst_59 = arith.constant dense<0.000000e+00> : vector<16x256xf32>
    %132 = tpu.matmul %131, %130, %cst_59 {dimension_numbers = #tpu.dot_dimension_numbers<[1], [0], [0], [1], [0, 0, 1, 1], [], []>} : vector<16x144xbf16>, vector<144x256xbf16>, vector<16x256xf32> -> vector<16x256xf32>
    %c0_60 = arith.constant 0 : index
    %c0_61 = arith.constant 0 : index
    %133 = vector.load %arg14[%c0_60, %c0_61] : memref<16x1xf32, #tpu.memory_space<vmem>>, vector<16x1xf32>
    %134 = vector.broadcast %133 : vector<16x1xf32> to vector<16x256xf32>
    %135 = arith.addf %132, %134 : vector<16x256xf32>
    %cst_62 = arith.constant 0.000000e+00 : f32
    %136 = vector.broadcast %cst_62 : f32 to vector<16x256xf32>
    %137 = arith.maximumf %135, %136 : vector<16x256xf32>
    %c17_i32_63 = arith.constant 17 : i32
    %138 = tpu.dynamic_rotate %2 by %c17_i32_63 dim 1 : vector<16x256xf32>, i32 -> vector<16x256xf32>
    %139 = vector.broadcast %3 : vector<1x256xf32> to vector<16x256xf32>
    %140 = arith.mulf %138, %139 : vector<16x256xf32>
    %cst_64 = arith.constant 1.000000e+00 : f32
    %141 = vector.broadcast %cst_64 : f32 to vector<1x256xf32>
    %142 = arith.subf %3, %141 : vector<1x256xf32>
    %cst_65 = arith.constant 3.000000e+38 : f32
    %143 = vector.broadcast %cst_65 : f32 to vector<1x256xf32>
    %144 = arith.mulf %142, %143 : vector<1x256xf32>
    %145 = vector.broadcast %144 : vector<1x256xf32> to vector<16x256xf32>
    %146 = arith.addf %140, %145 : vector<16x256xf32>
    %147 = arith.maximumf %2, %146 : vector<16x256xf32>
    %c16_i32_66 = arith.constant 16 : i32
    %148 = tpu.dynamic_rotate %2 by %c16_i32_66 dim 1 : vector<16x256xf32>, i32 -> vector<16x256xf32>
    %149 = vector.broadcast %4 : vector<1x256xf32> to vector<16x256xf32>
    %150 = arith.mulf %148, %149 : vector<16x256xf32>
    %cst_67 = arith.constant 1.000000e+00 : f32
    %151 = vector.broadcast %cst_67 : f32 to vector<1x256xf32>
    %152 = arith.subf %4, %151 : vector<1x256xf32>
    %cst_68 = arith.constant 3.000000e+38 : f32
    %153 = vector.broadcast %cst_68 : f32 to vector<1x256xf32>
    %154 = arith.mulf %152, %153 : vector<1x256xf32>
    %155 = vector.broadcast %154 : vector<1x256xf32> to vector<16x256xf32>
    %156 = arith.addf %150, %155 : vector<16x256xf32>
    %157 = arith.maximumf %147, %156 : vector<16x256xf32>
    %c15_i32_69 = arith.constant 15 : i32
    %158 = tpu.dynamic_rotate %2 by %c15_i32_69 dim 1 : vector<16x256xf32>, i32 -> vector<16x256xf32>
    %159 = vector.broadcast %5 : vector<1x256xf32> to vector<16x256xf32>
    %160 = arith.mulf %158, %159 : vector<16x256xf32>
    %cst_70 = arith.constant 1.000000e+00 : f32
    %161 = vector.broadcast %cst_70 : f32 to vector<1x256xf32>
    %162 = arith.subf %5, %161 : vector<1x256xf32>
    %cst_71 = arith.constant 3.000000e+38 : f32
    %163 = vector.broadcast %cst_71 : f32 to vector<1x256xf32>
    %164 = arith.mulf %162, %163 : vector<1x256xf32>
    %165 = vector.broadcast %164 : vector<1x256xf32> to vector<16x256xf32>
    %166 = arith.addf %160, %165 : vector<16x256xf32>
    %167 = arith.maximumf %157, %166 : vector<16x256xf32>
    %c1_i32_72 = arith.constant 1 : i32
    %168 = tpu.dynamic_rotate %2 by %c1_i32_72 dim 1 : vector<16x256xf32>, i32 -> vector<16x256xf32>
    %169 = vector.broadcast %6 : vector<1x256xf32> to vector<16x256xf32>
    %170 = arith.mulf %168, %169 : vector<16x256xf32>
    %cst_73 = arith.constant 1.000000e+00 : f32
    %171 = vector.broadcast %cst_73 : f32 to vector<1x256xf32>
    %172 = arith.subf %6, %171 : vector<1x256xf32>
    %cst_74 = arith.constant 3.000000e+38 : f32
    %173 = vector.broadcast %cst_74 : f32 to vector<1x256xf32>
    %174 = arith.mulf %172, %173 : vector<1x256xf32>
    %175 = vector.broadcast %174 : vector<1x256xf32> to vector<16x256xf32>
    %176 = arith.addf %170, %175 : vector<16x256xf32>
    %177 = arith.maximumf %167, %176 : vector<16x256xf32>
    %c255_i32_75 = arith.constant 255 : i32
    %178 = tpu.dynamic_rotate %2 by %c255_i32_75 dim 1 : vector<16x256xf32>, i32 -> vector<16x256xf32>
    %179 = vector.broadcast %8 : vector<1x256xf32> to vector<16x256xf32>
    %180 = arith.mulf %178, %179 : vector<16x256xf32>
    %cst_76 = arith.constant 1.000000e+00 : f32
    %181 = vector.broadcast %cst_76 : f32 to vector<1x256xf32>
    %182 = arith.subf %8, %181 : vector<1x256xf32>
    %cst_77 = arith.constant 3.000000e+38 : f32
    %183 = vector.broadcast %cst_77 : f32 to vector<1x256xf32>
    %184 = arith.mulf %182, %183 : vector<1x256xf32>
    %185 = vector.broadcast %184 : vector<1x256xf32> to vector<16x256xf32>
    %186 = arith.addf %180, %185 : vector<16x256xf32>
    %187 = arith.maximumf %177, %186 : vector<16x256xf32>
    %c241_i32_78 = arith.constant 241 : i32
    %188 = tpu.dynamic_rotate %2 by %c241_i32_78 dim 1 : vector<16x256xf32>, i32 -> vector<16x256xf32>
    %189 = vector.broadcast %9 : vector<1x256xf32> to vector<16x256xf32>
    %190 = arith.mulf %188, %189 : vector<16x256xf32>
    %cst_79 = arith.constant 1.000000e+00 : f32
    %191 = vector.broadcast %cst_79 : f32 to vector<1x256xf32>
    %192 = arith.subf %9, %191 : vector<1x256xf32>
    %cst_80 = arith.constant 3.000000e+38 : f32
    %193 = vector.broadcast %cst_80 : f32 to vector<1x256xf32>
    %194 = arith.mulf %192, %193 : vector<1x256xf32>
    %195 = vector.broadcast %194 : vector<1x256xf32> to vector<16x256xf32>
    %196 = arith.addf %190, %195 : vector<16x256xf32>
    %197 = arith.maximumf %187, %196 : vector<16x256xf32>
    %c240_i32_81 = arith.constant 240 : i32
    %198 = tpu.dynamic_rotate %2 by %c240_i32_81 dim 1 : vector<16x256xf32>, i32 -> vector<16x256xf32>
    %199 = vector.broadcast %10 : vector<1x256xf32> to vector<16x256xf32>
    %200 = arith.mulf %198, %199 : vector<16x256xf32>
    %cst_82 = arith.constant 1.000000e+00 : f32
    %201 = vector.broadcast %cst_82 : f32 to vector<1x256xf32>
    %202 = arith.subf %10, %201 : vector<1x256xf32>
    %cst_83 = arith.constant 3.000000e+38 : f32
    %203 = vector.broadcast %cst_83 : f32 to vector<1x256xf32>
    %204 = arith.mulf %202, %203 : vector<1x256xf32>
    %205 = vector.broadcast %204 : vector<1x256xf32> to vector<16x256xf32>
    %206 = arith.addf %200, %205 : vector<16x256xf32>
    %207 = arith.maximumf %197, %206 : vector<16x256xf32>
    %c239_i32_84 = arith.constant 239 : i32
    %208 = tpu.dynamic_rotate %2 by %c239_i32_84 dim 1 : vector<16x256xf32>, i32 -> vector<16x256xf32>
    %209 = vector.broadcast %11 : vector<1x256xf32> to vector<16x256xf32>
    %210 = arith.mulf %208, %209 : vector<16x256xf32>
    %cst_85 = arith.constant 1.000000e+00 : f32
    %211 = vector.broadcast %cst_85 : f32 to vector<1x256xf32>
    %212 = arith.subf %11, %211 : vector<1x256xf32>
    %cst_86 = arith.constant 3.000000e+38 : f32
    %213 = vector.broadcast %cst_86 : f32 to vector<1x256xf32>
    %214 = arith.mulf %212, %213 : vector<1x256xf32>
    %215 = vector.broadcast %214 : vector<1x256xf32> to vector<16x256xf32>
    %216 = arith.addf %210, %215 : vector<16x256xf32>
    %217 = arith.maximumf %207, %216 : vector<16x256xf32>
    %218 = arith.truncf %217 : vector<16x256xf32> to vector<16x256xbf16>
    %c0_87 = arith.constant 0 : index
    %c0_88 = arith.constant 0 : index
    %219 = vector.load %arg15[%c0_87, %c0_88] : memref<16x16xbf16, #tpu.memory_space<vmem>>, vector<16x16xbf16>
    %cst_89 = arith.constant dense<0.000000e+00> : vector<16x256xf32>
    %220 = tpu.matmul %219, %218, %cst_89 {dimension_numbers = #tpu.dot_dimension_numbers<[1], [0], [0], [1], [0, 0, 1, 1], [], []>} : vector<16x16xbf16>, vector<16x256xbf16>, vector<16x256xf32> -> vector<16x256xf32>
    %c0_90 = arith.constant 0 : index
    %c0_91 = arith.constant 0 : index
    %221 = vector.load %arg16[%c0_90, %c0_91] : memref<16x1xf32, #tpu.memory_space<vmem>>, vector<16x1xf32>
    %222 = vector.broadcast %221 : vector<16x1xf32> to vector<16x256xf32>
    %223 = arith.addf %220, %222 : vector<16x256xf32>
    %cst_92 = arith.constant 0.000000e+00 : f32
    %224 = vector.broadcast %cst_92 : f32 to vector<16x256xf32>
    %225 = arith.maximumf %223, %224 : vector<16x256xf32>
    %c0_93 = arith.constant 0 : index
    %c0_94 = arith.constant 0 : index
    %c0_95 = arith.constant 0 : index
    %226 = vector.load %arg17[%c0_93, %c0_94, %c0_95] : memref<1x80x256xf32, #tpu.memory_space<vmem>>, vector<1x16x256xf32>
    %227 = vector.shape_cast %226 : vector<1x16x256xf32> to vector<16x256xf32>
    %228 = vector.shape_cast %18 : vector<16x256xf32> to vector<1x16x256xf32>
    tpu.vector_store %arg17[%c0_93, %c0_94, %c0_95], %228 {strides = array<i32>} : memref<1x80x256xf32, #tpu.memory_space<vmem>>, vector<1x16x256xf32>,
    %c0_96 = arith.constant 0 : index
    %c16 = arith.constant 16 : index
    %c0_97 = arith.constant 0 : index
    %229 = vector.load %arg17[%c0_96, %c16, %c0_97] : memref<1x80x256xf32, #tpu.memory_space<vmem>>, vector<1x32x256xf32>
    %230 = vector.shape_cast %229 : vector<1x32x256xf32> to vector<32x256xf32>
    %231 = vector.shape_cast %60 : vector<32x256xf32> to vector<1x32x256xf32>
    tpu.vector_store %arg17[%c0_96, %c16, %c0_97], %231 {strides = array<i32>} : memref<1x80x256xf32, #tpu.memory_space<vmem>>, vector<1x32x256xf32>,
    %c0_98 = arith.constant 0 : index
    %c48 = arith.constant 48 : index
    %c0_99 = arith.constant 0 : index
    %232 = vector.load %arg17[%c0_98, %c48, %c0_99] : memref<1x80x256xf32, #tpu.memory_space<vmem>>, vector<1x16x256xf32>
    %233 = vector.shape_cast %232 : vector<1x16x256xf32> to vector<16x256xf32>
    %234 = vector.shape_cast %137 : vector<16x256xf32> to vector<1x16x256xf32>
    tpu.vector_store %arg17[%c0_98, %c48, %c0_99], %234 {strides = array<i32>} : memref<1x80x256xf32, #tpu.memory_space<vmem>>, vector<1x16x256xf32>,
    %c0_100 = arith.constant 0 : index
    %c64 = arith.constant 64 : index
    %c0_101 = arith.constant 0 : index
    %235 = vector.load %arg17[%c0_100, %c64, %c0_101] : memref<1x80x256xf32, #tpu.memory_space<vmem>>, vector<1x16x256xf32>
    %236 = vector.shape_cast %235 : vector<1x16x256xf32> to vector<16x256xf32>
    %237 = vector.shape_cast %225 : vector<16x256xf32> to vector<1x16x256xf32>
    tpu.vector_store %arg17[%c0_100, %c64, %c0_101], %237 {strides = array<i32>} : memref<1x80x256xf32, #tpu.memory_space<vmem>>, vector<1x16x256xf32>,
    return
  }
  func.func @transform_0(%arg0: i32) -> (i32, i32, i32) {
    %c0_i32 = arith.constant 0 : i32
    %c0_i32_0 = arith.constant 0 : i32
    %c0_i32_1 = arith.constant 0 : i32
    return %arg0, %c0_i32, %c0_i32_0 : i32, i32, i32
  }
  func.func @transform_1(%arg0: i32) -> (i32, i32) {
    %c0_i32 = arith.constant 0 : i32
    %c0_i32_0 = arith.constant 0 : i32
    %c0_i32_1 = arith.constant 0 : i32
    return %c0_i32, %c0_i32_0 : i32, i32
  }
  func.func @transform_2(%arg0: i32) -> (i32, i32) {
    %c0_i32 = arith.constant 0 : i32
    %c0_i32_0 = arith.constant 0 : i32
    %c0_i32_1 = arith.constant 0 : i32
    return %c0_i32, %c0_i32_0 : i32, i32
  }
  func.func @transform_3(%arg0: i32) -> (i32, i32) {
    %c0_i32 = arith.constant 0 : i32
    %c0_i32_0 = arith.constant 0 : i32
    %c0_i32_1 = arith.constant 0 : i32
    return %c0_i32, %c0_i32_0 : i32, i32
  }
  func.func @transform_4(%arg0: i32) -> (i32, i32) {
    %c0_i32 = arith.constant 0 : i32
    %c0_i32_0 = arith.constant 0 : i32
    %c0_i32_1 = arith.constant 0 : i32
    return %c0_i32, %c0_i32_0 : i32, i32
  }
  func.func @transform_5(%arg0: i32) -> (i32, i32) {
    %c0_i32 = arith.constant 0 : i32
    %c0_i32_0 = arith.constant 0 : i32
    %c0_i32_1 = arith.constant 0 : i32
    return %c0_i32, %c0_i32_0 : i32, i32
  }
  func.func @transform_6(%arg0: i32) -> (i32, i32) {
    %c0_i32 = arith.constant 0 : i32
    %c0_i32_0 = arith.constant 0 : i32
    %c0_i32_1 = arith.constant 0 : i32
    return %c0_i32, %c0_i32_0 : i32, i32
  }
  func.func @transform_7(%arg0: i32) -> (i32, i32) {
    %c0_i32 = arith.constant 0 : i32
    %c0_i32_0 = arith.constant 0 : i32
    %c0_i32_1 = arith.constant 0 : i32
    return %c0_i32, %c0_i32_0 : i32, i32
  }
  func.func @transform_8(%arg0: i32) -> (i32, i32) {
    %c0_i32 = arith.constant 0 : i32
    %c0_i32_0 = arith.constant 0 : i32
    %c0_i32_1 = arith.constant 0 : i32
    return %c0_i32, %c0_i32_0 : i32, i32
  }
  func.func @transform_9(%arg0: i32) -> (i32, i32) {
    %c0_i32 = arith.constant 0 : i32
    %c0_i32_0 = arith.constant 0 : i32
    %c0_i32_1 = arith.constant 0 : i32
    return %c0_i32, %c0_i32_0 : i32, i32
  }
  func.func @transform_10(%arg0: i32) -> (i32, i32) {
    %c0_i32 = arith.constant 0 : i32
    %c0_i32_0 = arith.constant 0 : i32
    %c0_i32_1 = arith.constant 0 : i32
    return %c0_i32, %c0_i32_0 : i32, i32
  }
  func.func @transform_11(%arg0: i32) -> (i32, i32) {
    %c0_i32 = arith.constant 0 : i32
    %c0_i32_0 = arith.constant 0 : i32
    %c0_i32_1 = arith.constant 0 : i32
    return %c0_i32, %c0_i32_0 : i32, i32
  }
  func.func @transform_12(%arg0: i32) -> (i32, i32) {
    %c0_i32 = arith.constant 0 : i32
    %c0_i32_0 = arith.constant 0 : i32
    %c0_i32_1 = arith.constant 0 : i32
    return %c0_i32, %c0_i32_0 : i32, i32
  }
  func.func @transform_13(%arg0: i32) -> (i32, i32) {
    %c0_i32 = arith.constant 0 : i32
    %c0_i32_0 = arith.constant 0 : i32
    %c0_i32_1 = arith.constant 0 : i32
    return %c0_i32, %c0_i32_0 : i32, i32
  }
  func.func @transform_14(%arg0: i32) -> (i32, i32) {
    %c0_i32 = arith.constant 0 : i32
    %c0_i32_0 = arith.constant 0 : i32
    %c0_i32_1 = arith.constant 0 : i32
    return %c0_i32, %c0_i32_0 : i32, i32
  }
  func.func @transform_15(%arg0: i32) -> (i32, i32) {
    %c0_i32 = arith.constant 0 : i32
    %c0_i32_0 = arith.constant 0 : i32
    %c0_i32_1 = arith.constant 0 : i32
    return %c0_i32, %c0_i32_0 : i32, i32
  }
  func.func @transform_16(%arg0: i32) -> (i32, i32, i32) {
    %c0_i32 = arith.constant 0 : i32
    %c0_i32_0 = arith.constant 0 : i32
    %c0_i32_1 = arith.constant 0 : i32
    return %arg0, %c0_i32, %c0_i32_0 : i32, i32, i32
  }
}

</mosaic_0001>

<bundles_post_ra>
// kernel: _inception_forward.1
= control target key start
LH: loop header
LB: loop body
LE: loop exit
PB: predicated region body
PF: predicated region fallthrough
CT: control target
= control target key end

     0   :  { %s2203_s21 = smov 0   ;;  %s3200_s0 = inlined_call_operand.vmem [shape: bf16[2,16,256], index: 0, kind: input, shape index: {}]   ;;  %s3201_s1 = inlined_call_operand.vmem [shape: f32[9,256], index: 1, kind: input, shape index: {}]   ;;  %s3202_s2 = inlined_call_operand.vmem [shape: bf16[16,16], index: 2, kind: input, shape index: {}]   ;;  %s3203_s3 = inlined_call_operand.vmem [shape: f32[16,1], index: 3, kind: input, shape index: {}]   ;;  %s3204_s4 = inlined_call_operand.vmem [shape: bf16[16,16], index: 4, kind: input, shape index: {}]   ;;  %s3205_s5 = inlined_call_operand.vmem [shape: f32[16,1], index: 5, kind: input, shape index: {}]   ;;  %s3206_s6 = inlined_call_operand.vmem [shape: bf16[32,144], index: 6, kind: input, shape index: {}]   ;;  %s3207_s7 = inlined_call_operand.vmem [shape: f32[32,1], index: 7, kind: input, shape index: {}]   ;;  %s3208_s8 = inlined_call_operand.vmem [shape: bf16[8,16], index: 8, kind: input, shape index: {}]   ;;  %s3209_s9 = inlined_call_operand.vmem [shape: f32[8,1], index: 9, kind: input, shape index: {}]   ;;  %s3210_s10 = inlined_call_operand.vmem [shape: bf16[16,72], index: 10, kind: input, shape index: {}]   ;;  %s3211_s11 = inlined_call_operand.vmem [shape: f32[16,1], index: 11, kind: input, shape index: {}]   ;;  %s3212_s12 = inlined_call_operand.vmem [shape: bf16[16,144], index: 12, kind: input, shape index: {}]   ;;  %s3213_s13 = inlined_call_operand.vmem [shape: f32[16,1], index: 13, kind: input, shape index: {}]   ;;  %s3214_s14 = inlined_call_operand.vmem [shape: bf16[16,16], index: 14, kind: input, shape index: {}]   ;;  %s3215_s15 = inlined_call_operand.vmem [shape: f32[16,1], index: 15, kind: input, shape index: {}]   ;;  %s3216_s16 = inlined_call_operand.vmem [shape: f32[2,80,256], index: 16, kind: output, shape index: {}]  }
   0x1   :  { %3232 = sst [smem:[#allocation10_spill]] %s3200_s0 }
   0x2 LB: > { %s1938_s22 = sadd.s32 4294967295, %s2107_s21   ;;  %p1942_p0 = scmp.ge.s32.totalorder %s2107_s21, 1  ;;  %s2107_s21 = sphi %s2203_s21, %s26_s21  }
   0x3   : > { %p462_p1 = scmp.lt.s32.totalorder %s2107_s21, 3 }
   0x5   : > { %p463_p2 = pnand %p1942_p0, %p462_p1 }
   0x7   : > { %466 = sbr.rel (%p463_p2) target bundleno = 1018 (0x3fa), region = 84 }
   0xe   : > { %p512_p3 = scmp.lt.s32.totalorder %s1938_s22, 1  ;;  %v1068_v0 = vld [vmem:[%s3209_s9] sm:$0xff]  ;;  %v3219_v1 = vmov 0   ;;  %s3233_s28 = sld [smem:[#allocation10_spill]]  ;;  %vm575_vm0 = vcmask 130048   ;;  %v629_v25 = vld [vmem:[%s3205_s5 + $0x8] sm:$0xff]  ;;  %v703_v36 = vlaneseq }
   0xf   : > { %1109 = vmatprep.mubr.bf16.mxu1 %v3219_v1  ;;  %2004 = vset.pattern.permute.xlu0 %v3219_v1  ;;  %v2088_v6 = vld [vmem:[%s3202_s2] sm:$0xff]   ;;  %s2110_s23 = smov 16   ;;  %s2111_s24 = smov 17   ;;  %v1199_v32 = vld [vmem:[%s3211_s11 + $0x8] sm:$0xff]  ;;  %vm1219_vm9 = vcmask 1043456   ;;  %vm1215_vm10 = vcmask 588800  }
  0x10   : > { %s3260_s22 = smov (!%p512_p3, %s1938_s22), 1  ;;  %1071 = vperm.xlu0 %2004, %v1068_v0   ;;  %611 = vmatprep.mubr.bf16.mxu0 %v3219_v1  ;;  %v1067_v7 = vld [vmem:[%s3208_s8] sm:$0xf]  ;;  %s2113_s26 = smov 1   ;;  %v2338_v39 = vand.u32 127, %v703_v36  ;;  %v712_v40 = vshrl.u32 %v703_v36, 7 }
  0x11   : > { %2005 = vset.pattern.permute.xlu1 %v3219_v1  ;;  %s1985_s25 = sshll.u32 %s3260_s22, 4  ;;  %v2089_v8 = vld [vmem:[%s3204_s4] sm:$0xff]   ;;  %s2114_s27 = smov 127  }
  0x12   : > { %s3217_s30 = smov 111   ;;  %v628_v24 = vld [vmem:[%s3205_s5] sm:$0xff]  ;;  %v2345_v44 = vsub.s32 0, %v712_v40  ;;  %v2347_v45 = vsub.s32 1, %v712_v40  ;;  %vm733_vm1 = vcmp.lt.s32.totalorder %v2338_v39, 16  ;;  %vm761_vm2 = vcmp.lt.s32.totalorder %v2338_v39, 15 }
  0x13   : > { %v1198_v33 = vld [vmem:[%s3211_s11] sm:$0xff]  ;;  %vm705_vm3 = vcmp.lt.s32.totalorder %v2338_v39, 17  ;;  %vm789_vm4 = vcmp.lt.s32.totalorder %v2338_v39, 1  ;;  %vm832_vm5 = vcmp.lt.s32.totalorder %v2338_v39, 127  ;;  %vm860_vm6 = vcmp.lt.s32.totalorder %v2338_v39, 113 }
  0x14   : > { %s516_s29 = scalar_lea.vmem %s3233_s28, %s1985_s25  ;;  %s2112_s25 = smov 15   ;;  %v2343_v43 = vld [vmem:[%s3201_s1 + $0x1] ss:$8 sm:$0x3]  ;;  %vm888_vm7 = vcmp.lt.s32.totalorder %v2338_v39, 112  ;;  %vm916_vm8 = vcmp.lt.s32.totalorder %v2338_v39, 111 }
  0x15   : > { %v2224_v2 = vld [vmem:[%s516_s29] sm:$0xff]  ;;  %v2226_v3 = vld [vmem:[%s516_s29 + $0x8] sm:$0xff]  ;;  %s2115_s28 = smov 113   ;;  %s3230_s29 = smov 112   ;;  %v2362_v48 = vrot.slane %v2343_v43, %v2345_v44  ;;  %v2366_v49 = vrot.slane %v2343_v43, %v2347_v45 }
  0x16   : > { %v1956_v4 = vcombine.high %v2224_v2, %v2226_v3  ;;  %v1955_v5 = vcombine.low %v2224_v2, %v2226_v3  ;;  %v3221_v28 = vunpack.c.l.bf16 %v2224_v2  ;;  %v3220_v29 = vunpack.c.h.bf16 %v2224_v2  ;;  %v2353_v46 = vld [vmem:[%s3201_s1] ss:$8 sm:$0x3]  ;;  %v2358_v47 = vld [vmem:[%s3201_s1 + $0x3] ss:$8 sm:$0x3] }
  0x17   : > { %v3223_v30 = vunpack.c.l.bf16 %v2226_v3  ;;  %v3222_v31 = vunpack.c.h.bf16 %v2226_v3  ;;  %v2371_v51 = vld [vmem:[%s3201_s1 + $0x2] ss:$8 sm:$0x3]  ;;  %v2382_v55 = vld [vmem:[%s3201_s1 + $0x5] ss:$8 sm:$0x3]  ;;  %v2386_v56 = vrot.slane %v2353_v46, %v2345_v44  ;;  %v2390_v57 = vrot.slane %v2353_v46, %v2347_v45 }
  0x18   : > { %1077 = vmatprep.subr.bf16.mxu1 %v1956_v4  ;;  %579 = vmatprep.subr.bf16.mxu0 %v1956_v4  ;;  %v2395_v58 = vrot.slane %v2358_v47, %v2347_v45  ;;  %v2399_v59 = vrot.slane %v2371_v51, %v2347_v45  ;;  %v2403_v60 = vrot.slane %v2358_v47, %v2345_v44 }
  0x19   : > { %1078 = vmatpush1.bf16.msra.mxu1 %v1955_v5  ;;  %580 = vmatpush1.bf16.msra.mxu0 %v1955_v5  ;;  %v2011_v34 = vpack.i.bf16 %v3222_v31, %v3220_v29  ;;  %v2006_v35 = vpack.i.bf16 %v3223_v30, %v3221_v28 }
  0x1a   : > { %648 = vmatprep.subr.bf16.mxu0 %v1956_v4  ;;  %v1949_v4 = vld [vmem:[%s3201_s1 + $0x4] ss:$8 sm:$0x3] }
  0x1c   : > { %1966 = vmatmul.mubr.msk.bf16.vlgmr.msra.gmra.mrb[0].mxu1 %vm575_vm0, %v1067_v7  ;;  %1957 = vmatmul.mubr.msk.bf16.vlgmr.msra.gmra.mrb[0].mxu0 %vm575_vm0, %v2088_v6 }
  0x1d   : > { %649 = vmatpush1.bf16.msra.mxu0 %v1955_v5  ;;  %680 = vmatprep.mubr.bf16.mxu0 %v3219_v1  ;;  %v2413_v5 = vrot.slane %v2382_v55, %v2347_v45 }
  0x1e   : > { %1258 = vmatprep.mubr.bf16.mxu1 %v3219_v1 }
  0x24   : > { %1959 = vmatmul.mubr.msk.bf16.vlgmr.msra.gmra.mrb[4].mxu0 %vm575_vm0, %v2089_v8 }
  0x8f   : > { %v1072_v9 = vpop.permute.xlu0 %1071 }
  0xef   : > { %v1111_v10 = vpop.f32.mrb[0].mxu1  ;;  %v2274_v18 = vpop.f32.mrb[0].mxu0 }
  0xf0   : > { %v1112_v11 = vadd.f32 %v1111_v10, %v1072_v9  ;;  %v1113_v12 = vpop.f32.mrb[1].mxu1  ;;  %3234 = vst [vmem:[#allocation2_spill] sm:$0xff] %v2274_v18  ;;  %v2280_v19 = vpop.f32.mrb[1].mxu0 }
  0xf1   : > { %v1115_v13 = vpop.f32.mrb[2].mxu1  ;;  %v1114_v15 = vadd.f32 %v1113_v12, %v1072_v9  ;;  %3235 = vst [vmem:[#allocation3_spill] sm:$0xff] %v2280_v19  ;;  %v2282_v20 = vpop.f32.mrb[2].mxu0 }
  0xf2   : > { %v2246_v14 = vmax.f32 %v1112_v11, 0.0  ;;  %v1116_v16 = vpop.f32.mrb[3].mxu1  ;;  %3236 = vst [vmem:[#allocation4_spill] sm:$0xff] %v2282_v20  ;;  %v2284_v21 = vpop.f32.mrb[3].mxu0 }
  0xf3   : > { %v2252_v17 = vmax.f32 %v1114_v15, 0.0  ;;  %3237 = vst [vmem:[#allocation5_spill] sm:$0xff] %v2284_v21  ;;  %v2430_v15 = vrot.slane %v2371_v51, %v2345_v44  ;;  %v2433_v16 = vrot.slane %v1949_v4, %v2347_v45 }
  0xf4   : > { %1128 = vrot.lane.b32.xlu1 %v2246_v14, %s2110_s23  ;;  %1120 = vrot.lane.b32.xlu0 %v2246_v14, %s2111_s24 }
  0xf5   : > { %3238 = vst [vmem:[#allocation6_spill] sm:$0xff] %v2433_v16 }
  0xf7   : > { %v2286_v22 = vpop.f32.mrb[4].mxu0 }
  0xf8   : > { %1136 = vrot.lane.b32.xlu1 %v2246_v14, %s2112_s25  ;;  %1130 = vrot.lane.b32.xlu0 %v2252_v17, %s2110_s23  ;;  %v2292_v23 = vpop.f32.mrb[5].mxu0 }
  0xf9   : > { %v2300_v26 = vpop.f32.mrb[6].mxu0 }
  0xfa   : > { %v2302_v27 = vpop.f32.mrb[7].mxu0 }
  0xfc   : > { %1144 = vrot.lane.b32.xlu1 %v2246_v14, %s2113_s26  ;;  %1138 = vrot.lane.b32.xlu0 %v2252_v17, %s2112_s25 }
 0x100   : > { %1122 = vrot.lane.b32.xlu1 %v2252_v17, %s2111_s24  ;;  %1146 = vrot.lane.b32.xlu0 %v2252_v17, %s2113_s26 }
 0x104   : > { %1154 = vrot.lane.b32.xlu1 %v2246_v14, %s2114_s27  ;;  %1156 = vrot.lane.b32.xlu0 %v2252_v17, %s2114_s27 }
 0x108   : > { %1162 = vrot.lane.b32.xlu1 %v2246_v14, %s2115_s28  ;;  %1164 = vrot.lane.b32.xlu0 %v2252_v17, %s2115_s28 }
 0x10c   : > { %1170 = vrot.lane.b32.xlu1 %v2246_v14, %s3230_s29  ;;  %1172 = vrot.lane.b32.xlu0 %v2252_v17, %s3230_s29 }
 0x110   : > { %1178 = vrot.lane.b32.xlu1 %v2246_v14, %s3217_s30  ;;  %1180 = vrot.lane.b32.xlu0 %v2252_v17, %s3217_s30 }
 0x114   : > { %632 = vperm.xlu1 %2005, %v628_v24   ;;  %637 = vperm.xlu0 %2004, %v629_v25  }
 0x118   : > { %1207 = vperm.xlu0 %2004, %v1199_v32   ;;  %1202 = vperm.xlu1 %2005, %v1198_v33  }
 0x11c   : > { %2012 = vrot.lane.b32.xlu0 %v2011_v34, %s2111_s24  ;;  %2007 = vrot.lane.b32.xlu1 %v2006_v35, %s2111_s24 }
 0x120   : > { %2022 = vrot.lane.b32.xlu0 %v2011_v34, %s2110_s23  ;;  %2017 = vrot.lane.b32.xlu1 %v2006_v35, %s2110_s23 }
 0x124   : > { %2032 = vrot.lane.b32.xlu0 %v2011_v34, %s2112_s25  ;;  %2027 = vrot.lane.b32.xlu1 %v2006_v35, %s2112_s25 }
 0x128   : > { %2042 = vrot.lane.b32.xlu0 %v2011_v34, %s2113_s26  ;;  %2037 = vrot.lane.b32.xlu1 %v2006_v35, %s2113_s26 }
 0x12c   : > { %2052 = vrot.lane.b32.xlu0 %v2011_v34, %s2114_s27  ;;  %2047 = vrot.lane.b32.xlu1 %v2006_v35, %s2114_s27 }
 0x130   : > { %2062 = vrot.lane.b32.xlu0 %v2011_v34, %s2115_s28  ;;  %2057 = vrot.lane.b32.xlu1 %v2006_v35, %s2115_s28 }
 0x134   : > { %2072 = vrot.lane.b32.xlu0 %v2011_v34, %s3230_s29  ;;  %2067 = vrot.lane.b32.xlu1 %v2006_v35, %s3230_s29 }
 0x138   : > { %2082 = vrot.lane.b32.xlu0 %v2011_v34, %s3217_s30  ;;  %2077 = vrot.lane.b32.xlu1 %v2006_v35, %s3217_s30  ;;  %s3246_s30 = smov 111  }
 0x166   : > { %v1129_v37 = vpop.permute.xlu1 %1128  ;;  %v1121_v38 = vpop.permute.xlu0 %1120 }
 0x16a   : > { %v1137_v41 = vpop.permute.xlu1 %1136  ;;  %v1131_v42 = vpop.permute.xlu0 %1130 }
 0x16b   : > { %v1132_v53 = vsel %vm733_vm1, %v1129_v37, %v1131_v42  ;;  %v1133_v54 = vsel %vm733_vm1, %v1131_v42, %v1129_v37  ;;  %v2441_v37 = vrot.slane %v2382_v55, %v2345_v44 }
 0x16c   : > { %v1134_v61 = vmul.f32 %v1133_v54, %v2362_v48  ;;  %v1135_v62 = vmul.f32 %v1132_v53, %v2366_v49  ;;  %v2455_v53 = vrot.slane %v1949_v4, %v2345_v44  ;;  %v2460_v54 = vld [vmem:[%s3201_s1 + $0x7] ss:$8 sm:$0x3] }
 0x16e   : > { %v1145_v50 = vpop.permute.xlu1 %1144  ;;  %v1139_v52 = vpop.permute.xlu0 %1138  ;;  %3239 = vst [vmem:[#allocation7_spill] sm:$0xff] %v2455_v53 }
 0x16f   : > { %v1140_v6 = vsel %vm761_vm2, %v1137_v41, %v1139_v52  ;;  %v1141_v24 = vsel %vm761_vm2, %v1139_v52, %v1137_v41 }
 0x170   : > { %v1143_v25 = vmul.f32 %v1140_v6, %v2399_v59  ;;  %v1142_v52 = vmul.f32 %v1141_v24, %v2430_v15 }
 0x172   : > { %v1123_v63 = vpop.permute.xlu1 %1122  ;;  %v1147_v0 = vpop.permute.xlu0 %1146 }
 0x173   : > { %v1124_v7 = vsel %vm705_vm3, %v1121_v38, %v1123_v63  ;;  %v1125_v8 = vsel %vm705_vm3, %v1123_v63, %v1121_v38  ;;  %v1148_v9 = vsel %vm789_vm4, %v1145_v50, %v1147_v0  ;;  %v1149_v12 = vsel %vm789_vm4, %v1147_v0, %v1145_v50  ;;  %v2451_v50 = vld [vmem:[%s3201_s1 + $0x6] ss:$8 sm:$0x3] }
 0x174   : > { %v1126_v10 = vmul.f32 %v1125_v8, %v2386_v56  ;;  %v1127_v11 = vmul.f32 %v1124_v7, %v2390_v57  ;;  %v1151_v13 = vmul.f32 %v1148_v9, %v2395_v58  ;;  %v1150_v36 = vmul.f32 %v1149_v12, %v2403_v60  ;;  %v2477_v8 = vld [vmem:[%s3201_s1 + $0x10] ss:$8 sm:$0x3] }
 0x175   : > { %v1153_v63 = vmul.f32 %v2252_v17, %v2433_v16  ;;  %v2468_v4 = vrot.slane %v2451_v50, %v2345_v44  ;;  %v2472_v7 = vrot.slane %v2451_v50, %v2347_v45  ;;  %v2482_v17 = vrot.slane %v2460_v54, %v2345_v44 }
 0x176   : > { %v1186_v32 = vpack.c.bf16 %v1134_v61, %v1126_v10  ;;  %v1155_v33 = vpop.permute.xlu1 %1154  ;;  %v1157_v34 = vpop.permute.xlu0 %1156  ;;  %v1187_v35 = vpack.c.bf16 %v1135_v62, %v1127_v11  ;;  %v1189_v42 = vpack.c.bf16 %v1151_v13, %v1143_v25  ;;  %v1188_v0 = vpack.c.bf16 %v1150_v36, %v1142_v52 }
 0x177   : > { %v1159_v38 = vsel %vm832_vm5, %v1157_v34, %v1155_v33  ;;  %v1158_v40 = vsel %vm832_vm5, %v1155_v33, %v1157_v34  ;;  %v2486_v10 = vrot.slane %v2460_v54, %v2347_v45  ;;  %v1152_v11 = vmul.f32 %v2246_v14, %v2455_v53 }
 0x178   : > { %v1161_v41 = vmul.f32 %v1159_v38, %v2413_v5  ;;  %1226 = vmatprep.subr.bf16.mxu1 %v1187_v35  ;;  %v1160_v6 = vmul.f32 %v1158_v40, %v2441_v37  ;;  %v2505_v35 = vrot.slane %v2477_v8, %v2347_v45 }
 0x179   : > { %1227 = vmatpush1.bf16.msra.mxu1 %v1186_v32  ;;  %v2497_v32 = vrot.slane %v2477_v8, %v2345_v44 }
 0x17a   : > { %v1163_v61 = vpop.permute.xlu1 %1162  ;;  %1228 = vmatprep.subr.bf16.mxu1 %v1189_v42  ;;  %v1165_v62 = vpop.permute.xlu0 %1164  ;;  %v1191_v9 = vpack.c.bf16 %v1161_v41, %v1153_v63  ;;  %v1190_v33 = vpack.c.bf16 %v1160_v6, %v1152_v11 }
 0x17b   : > { %v1166_v12 = vsel %vm860_vm6, %v1163_v61, %v1165_v62  ;;  %v1167_v13 = vsel %vm860_vm6, %v1165_v62, %v1163_v61 }
 0x17c   : > { %v1168_v36 = vmul.f32 %v1166_v12, %v2468_v4  ;;  %v1169_v38 = vmul.f32 %v1167_v13, %v2472_v7 }
 0x17d   : > { %1229 = vmatpush1.bf16.msra.mxu1 %v1188_v0 }
 0x17e   : > { %v1171_v24 = vpop.permute.xlu1 %1170  ;;  %1230 = vmatprep.subr.bf16.mxu1 %v1191_v9  ;;  %v1173_v25 = vpop.permute.xlu0 %1172 }
 0x17f   : > { %v1174_v14 = vsel %vm888_vm7, %v1171_v24, %v1173_v25  ;;  %v1175_v34 = vsel %vm888_vm7, %v1173_v25, %v1171_v24  ;;  %v2090_v24 = vld [vmem:[%s3210_s10] sm:$0xff]   ;;  %v1973_v25 = vadd.f32 -1.0, %v2353_v46  ;;  %v1978_v46 = vadd.f32 -1.0, %v2451_v50 }
 0x180   : > { %v1176_v40 = vmul.f32 %v1174_v14, %v2482_v17  ;;  %v1177_v41 = vmul.f32 %v1175_v34, %v2486_v10  ;;  %v1974_v34 = vadd.f32 -1.0, %v2343_v43 }
 0x181   : > { %1231 = vmatpush1.bf16.msra.mxu1 %v1190_v33 }
 0x182   : > { %v1192_v42 = vpack.c.bf16 %v1176_v40, %v1168_v36  ;;  %v1179_v52 = vpop.permute.xlu1 %1178  ;;  %v1181_v61 = vpop.permute.xlu0 %1180  ;;  %v1193_v62 = vpack.c.bf16 %v1177_v41, %v1169_v38  ;;  %v1975_v36 = vadd.f32 -1.0, %v2371_v51 }
 0x183   : > { %v1182_v63 = vsel %vm916_vm8, %v1179_v52, %v1181_v61  ;;  %v1183_v0 = vsel %vm916_vm8, %v1181_v61, %v1179_v52  ;;  %v1513_v52 = vmul.f32 3e+38, %v1973_v25  ;;  %v1976_v61 = vadd.f32 -1.0, %v2358_v47 }
 0x184   : > { %v1184_v6 = vmul.f32 %v1182_v63, %v2497_v32  ;;  %v1185_v9 = vmul.f32 %v1183_v0, %v2505_v35  ;;  %1232 = vmatprep.subr.bf16.mxu1 %v1193_v62  ;;  %v1977_v62 = vadd.f32 -1.0, %v2382_v55  ;;  %v1587_v0 = vmul.f32 3e+38, %v1975_v36 }
 0x185   : > { %1233 = vmatpush1.bf16.msra.mxu1 %v1192_v42  ;;  %v2569_v25 = vmul.f32 3e+38, %v1978_v46 }
 0x186   : > { %v1194_v11 = vpack.c.bf16 %v1184_v6, %v1184_v6  ;;  %v1195_v12 = vpack.c.bf16 %v1185_v9, %v1185_v9  ;;  %v1624_v6 = vmul.f32 3e+38, %v1976_v61  ;;  %v2558_v9 = vmul.f32 3e+38, %v1977_v62 }
 0x187   : > { %v2585_v62 = vrot.slane %v1587_v0, %v2347_v45 }
 0x188   : > { %1968 = vmatprep.subr.msk.bf16.mxu1 %vm1219_vm9, %v1195_v12  ;;  %v1221_v13 = vsel %vm1219_vm9, %v1194_v11, 0  ;;  %v2561_v11 = vadd.f32 -1.0, %v2460_v54  ;;  %v2588_v46 = vrot.slane %v1624_v6, %v2345_v44  ;;  %v2595_v1 = vrot.slane %v2558_v9, %v2345_v44 }
 0x189   : > { %1235 = vmatpush1.bf16.msra.mxu1 %v1221_v13  ;;  %v1518_v13 = vrot.slane %v1513_v52, %v2345_v44 }
 0x18c   : > { %1969 = vmatmul.mubr.msk.bf16.vlgmr.msra.gmra.mrb[4].mxu1 %vm1215_vm10, %v2090_v24  ;;  %v1522_v24 = vrot.slane %v1513_v52, %v2347_v45 }
 0x193   : > { %v633_v33 = vpop.permute.xlu1 %632  ;;  %v638_v14 = vpop.permute.xlu0 %637 }
 0x194   : > { %v683_v38 = vadd.f32 %v2286_v22, %v633_v33  ;;  %v685_v40 = vadd.f32 %v2292_v23, %v633_v33  ;;  %v687_v41 = vadd.f32 %v2300_v26, %v638_v14  ;;  %v689_v42 = vadd.f32 %v2302_v27, %v638_v14 }
 0x195   : > { %v1550_v27 = vmul.f32 3e+38, %v1974_v34 }
 0x196   : > { %v2530_v63 = vmax.f32 %v683_v38, 0.0  ;;  %v2532_v43 = vmax.f32 %v685_v40, 0.0  ;;  %v2534_v51 = vmax.f32 %v687_v41, 0.0  ;;  %v2536_v22 = vmax.f32 %v689_v42, 0.0 }
 0x197   : > { %v2538_v23 = vpop.permute.xlu0 %1207  ;;  %v2540_v26 = vpop.permute.xlu1 %1202  ;;  %v1555_v36 = vrot.slane %v1550_v27, %v2345_v44  ;;  %v1559_v54 = vrot.slane %v1550_v27, %v2347_v45  ;;  %v2576_v38 = vrot.slane %v1587_v0, %v2345_v44  ;;  %v2591_v27 = vrot.slane %v1624_v6, %v2347_v45 }
 0x198   : > { %3240 = vst [vmem:[#allocation8_spill] sm:$0xff] %v2538_v23  ;;  %3241 = vst [vmem:[#allocation9_spill] sm:$0xff] %v2540_v26  ;;  %697 = vrot.lane.b32.xlu0 %v2534_v51, %s2111_s24  ;;  %695 = vrot.lane.b32.xlu1 %v2530_v63, %s2111_s24  ;;  %v2548_v47 = vmul.f32 %v2433_v16, %v2532_v43  ;;  %v2552_v55 = vmul.f32 %v2433_v16, %v2536_v22 }
 0x199   : > { %v2556_v50 = vmul.f32 %v2455_v53, %v2530_v63  ;;  %v2565_v12 = vmul.f32 %v2455_v53, %v2534_v51 }
 0x19b   : > { %v2013_v14 = vpop.permute.xlu0 %2012  ;;  %v2008_v34 = vpop.permute.xlu1 %2007 }
 0x19c   : > { %727 = vrot.lane.b32.xlu0 %v2534_v51, %s2110_s23  ;;  %725 = vrot.lane.b32.xlu1 %v2530_v63, %s2110_s23  ;;  %v2015_v41 = vunpack.i.h.bf16 %v2013_v14  ;;  %v2014_v42 = vunpack.i.l.bf16 %v2013_v14  ;;  %v2010_v52 = vunpack.i.h.bf16 %v2008_v34  ;;  %v2009_v61 = vunpack.i.l.bf16 %v2008_v34 }
 0x19e   : > { %v1505_v40 = vsel %vm705_vm3, %v2010_v52, %v2015_v41  ;;  %v1507_v14 = vsel %vm705_vm3, %v2015_v41, %v2010_v52  ;;  %v1504_v0 = vsel %vm705_vm3, %v2009_v61, %v2014_v42  ;;  %v1506_v34 = vsel %vm705_vm3, %v2014_v42, %v2009_v61 }
 0x19f   : > { %v1510_v33 = vmul.f32 %v1507_v14, %v2386_v56  ;;  %v1511_v6 = vmul.f32 %v1505_v40, %v2390_v57  ;;  %v1508_v29 = vmul.f32 %v1506_v34, %v2386_v56  ;;  %v1509_v28 = vmul.f32 %v1504_v0, %v2390_v57  ;;  %v2023_v31 = vpop.permute.xlu0 %2022  ;;  %v2018_v30 = vpop.permute.xlu1 %2017 }
 0x1a0   : > { %755 = vrot.lane.b32.xlu0 %v2534_v51, %s2112_s25  ;;  %753 = vrot.lane.b32.xlu1 %v2530_v63, %s2112_s25  ;;  %v2025_v41 = vunpack.i.h.bf16 %v2023_v31  ;;  %v2024_v52 = vunpack.i.l.bf16 %v2023_v31  ;;  %v2020_v21 = vunpack.i.h.bf16 %v2018_v30  ;;  %v2019_v42 = vunpack.i.l.bf16 %v2018_v30 }
 0x1a1   : > { %v1527_v61 = vadd.f32 %v1518_v13, %v1510_v33  ;;  %v1528_v14 = vadd.f32 %v1522_v24, %v1511_v6  ;;  %v1525_v20 = vadd.f32 %v1518_v13, %v1508_v29  ;;  %v1526_v40 = vadd.f32 %v1522_v24, %v1509_v28 }
 0x1a2   : > { %v1542_v34 = vsel %vm733_vm1, %v2020_v21, %v2025_v41  ;;  %v1544_v0 = vsel %vm733_vm1, %v2025_v41, %v2020_v21  ;;  %v1541_v19 = vsel %vm733_vm1, %v2019_v42, %v2024_v52  ;;  %v1543_v18 = vsel %vm733_vm1, %v2024_v52, %v2019_v42 }
 0x1a3   : > { %v3242_v31 = vunpack.c.l.bf16 %v2226_v3  ;;  %v3243_v30 = vunpack.c.h.bf16 %v2226_v3  ;;  %v3244_v28 = vunpack.c.l.bf16 %v2224_v2  ;;  %v3245_v13 = vunpack.c.h.bf16 %v2224_v2  ;;  %v2033_v6 = vpop.permute.xlu0 %2032  ;;  %v2028_v21 = vpop.permute.xlu1 %2027 }
 0x1a4   : > { %783 = vrot.lane.b32.xlu0 %v2534_v51, %s2113_s26  ;;  %781 = vrot.lane.b32.xlu1 %v2530_v63, %s2113_s26  ;;  %v1547_v41 = vmul.f32 %v1544_v0, %v2362_v48  ;;  %v1548_v52 = vmul.f32 %v1542_v34, %v2366_v49  ;;  %v1545_v3 = vmul.f32 %v1543_v18, %v2362_v48  ;;  %v2035_v42 = vunpack.i.h.bf16 %v2033_v6 }
 0x1a5   : > { %v1531_v16 = vmax.f32 %v3242_v31, %v1527_v61  ;;  %v1532_v33 = vmax.f32 %v3243_v30, %v1528_v14  ;;  %v1529_v29 = vmax.f32 %v3244_v28, %v1525_v20  ;;  %v1530_v24 = vmax.f32 %v3245_v13, %v1526_v40 }
 0x1a6   : > { %v1546_v20 = vmul.f32 %v1541_v19, %v2366_v49  ;;  %v2034_v61 = vunpack.i.l.bf16 %v2033_v6  ;;  %v2030_v2 = vunpack.i.h.bf16 %v2028_v21  ;;  %v2029_v14 = vunpack.i.l.bf16 %v2028_v21 }
 0x1a7   : > { %v1564_v40 = vadd.f32 %v1555_v36, %v1547_v41  ;;  %v1565_v31 = vadd.f32 %v1559_v54, %v1548_v52  ;;  %v1562_v30 = vadd.f32 %v1555_v36, %v1545_v3  ;;  %v2639_v28 = vrot.slane %v2558_v9, %v2347_v45  ;;  %v2043_v34 = vpop.permute.xlu0 %2042  ;;  %v2038_v6 = vpop.permute.xlu1 %2037 }
 0x1a8   : > { %v1563_v13 = vadd.f32 %v1559_v54, %v1546_v20  ;;  %v1579_v0 = vsel %vm761_vm2, %v2030_v2, %v2035_v42  ;;  %v1581_v18 = vsel %vm761_vm2, %v2035_v42, %v2030_v2  ;;  %v1578_v19 = vsel %vm761_vm2, %v2029_v14, %v2034_v61  ;;  %826 = vrot.lane.b32.xlu0 %v2534_v51, %s2114_s27 }
 0x1a9   : > { %824 = vrot.lane.b32.xlu1 %v2530_v63, %s2114_s27  ;;  %v1566_v9 = vmax.f32 %v1529_v29, %v1562_v30  ;;  %v1568_v36 = vmax.f32 %v1531_v16, %v1564_v40  ;;  %v1569_v54 = vmax.f32 %v1532_v33, %v1565_v31  ;;  %v2045_v21 = vunpack.i.h.bf16 %v2043_v34 }
 0x1aa   : > { %v1567_v41 = vmax.f32 %v1530_v24, %v1563_v13  ;;  %v1584_v52 = vmul.f32 %v1581_v18, %v2430_v15  ;;  %v1585_v3 = vmul.f32 %v1579_v0, %v2399_v59  ;;  %v1580_v42 = vsel %vm761_vm2, %v2034_v61, %v2029_v14 }
 0x1ab   : > { %v1582_v20 = vmul.f32 %v1580_v42, %v2430_v15  ;;  %v1583_v2 = vmul.f32 %v1578_v19, %v2399_v59  ;;  %v2044_v53 = vunpack.i.l.bf16 %v2043_v34  ;;  %v2040_v23 = vunpack.i.h.bf16 %v2038_v6  ;;  %v2053_v29 = vpop.permute.xlu0 %2052  ;;  %v2048_v24 = vpop.permute.xlu1 %2047 }
 0x1ac   : > { %v1601_v26 = vadd.f32 %v2576_v38, %v1584_v52  ;;  %v1602_v16 = vadd.f32 %v2585_v62, %v1585_v3  ;;  %v2039_v33 = vunpack.i.l.bf16 %v2038_v6  ;;  %v2661_v40 = vrot.slane %v2569_v25, %v2345_v44  ;;  %854 = vrot.lane.b32.xlu0 %v2534_v51, %s2115_s28 }
 0x1ad   : > { %852 = vrot.lane.b32.xlu1 %v2530_v63, %s2115_s28  ;;  %v1599_v61 = vadd.f32 %v2576_v38, %v1582_v20  ;;  %v1600_v14 = vadd.f32 %v2585_v62, %v1583_v2  ;;  %v1616_v31 = vsel %vm789_vm4, %v2040_v23, %v2045_v21  ;;  %v2055_v30 = vunpack.i.h.bf16 %v2053_v29 }
 0x1ae   : > { %v1605_v13 = vmax.f32 %v1568_v36, %v1601_v26  ;;  %v1606_v0 = vmax.f32 %v1569_v54, %v1602_v16  ;;  %v1618_v18 = vsel %vm789_vm4, %v2045_v21, %v2040_v23  ;;  %v1622_v19 = vmul.f32 %v1616_v31, %v2395_v58 }
 0x1af   : > { %v1603_v34 = vmax.f32 %v1566_v9, %v1599_v61  ;;  %v1604_v6 = vmax.f32 %v1567_v41, %v1600_v14  ;;  %v1621_v52 = vmul.f32 %v1618_v18, %v2403_v60  ;;  %v1615_v38 = vsel %vm789_vm4, %v2039_v33, %v2044_v53  ;;  %v2063_v54 = vpop.permute.xlu0 %2062  ;;  %v2058_v42 = vpop.permute.xlu1 %2057 }
 0x1b0   : > { %v1639_v62 = vadd.f32 %v2591_v27, %v1622_v19  ;;  %v1617_v3 = vsel %vm789_vm4, %v2044_v53, %v2039_v33  ;;  %v1620_v26 = vmul.f32 %v1615_v38, %v2395_v58  ;;  %v2054_v36 = vunpack.i.l.bf16 %v2053_v29  ;;  %882 = vrot.lane.b32.xlu0 %v2534_v51, %s3230_s29 }
 0x1b1   : > { %880 = vrot.lane.b32.xlu1 %v2530_v63, %s3230_s29  ;;  %v1638_v23 = vadd.f32 %v2588_v46, %v1621_v52  ;;  %v1619_v9 = vmul.f32 %v1617_v3, %v2403_v60  ;;  %v2050_v21 = vunpack.i.h.bf16 %v2048_v24  ;;  %v2049_v41 = vunpack.i.l.bf16 %v2048_v24 }
 0x1b2   : > { %v1637_v20 = vadd.f32 %v2591_v27, %v1620_v26  ;;  %v1643_v53 = vmax.f32 %v1606_v0, %v1639_v62  ;;  %v2065_v2 = vunpack.i.h.bf16 %v2063_v54  ;;  %v2064_v16 = vunpack.i.l.bf16 %v2063_v54 }
 0x1b3   : > { %v1636_v33 = vadd.f32 %v2588_v46, %v1619_v9  ;;  %v1642_v29 = vmax.f32 %v1605_v13, %v1638_v23  ;;  %v1653_v61 = vsel %vm832_vm5, %v2050_v21, %v2055_v30  ;;  %v1655_v14 = vsel %vm832_vm5, %v2055_v30, %v2050_v21  ;;  %v2073_v0 = vpop.permute.xlu0 %2072  ;;  %v2068_v3 = vpop.permute.xlu1 %2067 }
 0x1b4   : > { %v1641_v31 = vmax.f32 %v1604_v6, %v1637_v20  ;;  %v1658_v18 = vmul.f32 %v1653_v61, %v2441_v37  ;;  %v1659_v19 = vmul.f32 %v1655_v14, %v2413_v5  ;;  %v1652_v27 = vsel %vm832_vm5, %v2049_v41, %v2054_v36  ;;  %910 = vrot.lane.b32.xlu0 %v2534_v51, %s3246_s30 }
 0x1b5   : > { %908 = vrot.lane.b32.xlu1 %v2530_v63, %s3246_s30  ;;  %v1640_v46 = vmax.f32 %v1603_v34, %v1636_v33  ;;  %v1654_v24 = vsel %vm832_vm5, %v2054_v36, %v2049_v41  ;;  %v1656_v30 = vmul.f32 %v1652_v27, %v2441_v37  ;;  %v2060_v13 = vunpack.i.h.bf16 %v2058_v42 }
 0x1b6   : > { %v1675_v6 = vadd.f32 %v2595_v1, %v1658_v18  ;;  %v1676_v52 = vadd.f32 %v2639_v28, %v1659_v19  ;;  %v1657_v38 = vmul.f32 %v1654_v24, %v2413_v5  ;;  %v2059_v62 = vunpack.i.l.bf16 %v2058_v42 }
 0x1b7   : > { %v1673_v51 = vadd.f32 %v2595_v1, %v1656_v30  ;;  %v1690_v63 = vsel %vm860_vm6, %v2060_v13, %v2065_v2  ;;  %v1692_v34 = vsel %vm860_vm6, %v2065_v2, %v2060_v13  ;;  %v1735_v26 = vmul.f32 3e+38, %v2561_v11  ;;  %v2078_v27 = vpop.permute.xlu1 %2077 }
 0x1b8   : > { %v1674_v36 = vadd.f32 %v2639_v28, %v1657_v38  ;;  %v1679_v54 = vmax.f32 %v1642_v29, %v1675_v6  ;;  %v2714_v23 = vmax.f32 %v1643_v53, %v1676_v52  ;;  %v1695_v9 = vmul.f32 %v1690_v63, %v2468_v4  ;;  %701 = vrot.lane.b32.xlu0 %v2536_v22, %s2111_s24  ;;  %v2083_v29 = vpop.permute.xlu0 %2082 }
 0x1b9   : > { %699 = vrot.lane.b32.xlu1 %v2532_v43, %s2111_s24  ;;  %v1677_v1 = vmax.f32 %v1640_v46, %v1673_v51  ;;  %v1689_v42 = vsel %vm860_vm6, %v2059_v62, %v2064_v16  ;;  %v2075_v21 = vunpack.i.h.bf16 %v2073_v0  ;;  %v2074_v41 = vunpack.i.l.bf16 %v2073_v0 }
 0x1ba   : > { %v2723_v11 = vmax.f32 %v1641_v31, %v1674_v36  ;;  %v1712_v28 = vadd.f32 %v2661_v40, %v1695_v9  ;;  %v1691_v20 = vsel %vm860_vm6, %v2064_v16, %v2059_v62  ;;  %v1693_v53 = vmul.f32 %v1689_v42, %v2468_v4 }
 0x1bb   : > { %v2070_v2 = vunpack.i.h.bf16 %v2068_v3  ;;  %v2069_v33 = vunpack.i.l.bf16 %v2068_v3  ;;  %v1740_v18 = vrot.slane %v1735_v26, %v2345_v44  ;;  %v2085_v19 = vunpack.i.h.bf16 %v2083_v29 }
 0x1bc   : > { %v1710_v61 = vadd.f32 %v2661_v40, %v1693_v53  ;;  %v1716_v14 = vmax.f32 %v1679_v54, %v1712_v28  ;;  %731 = vrot.lane.b32.xlu0 %v2536_v22, %s2110_s23  ;;  %v2080_v46 = vunpack.i.h.bf16 %v2078_v27  ;;  %v2084_v13 = vunpack.i.l.bf16 %v2083_v29  ;;  %v2091_v28 = vld [vmem:[%s3206_s6 + $0x4] ss:$8 sps:$4 sm:$0xff]  }
 0x1bd   : > { %729 = vrot.lane.b32.xlu1 %v2532_v43, %s2110_s23  ;;  %v1727_v16 = vsel %vm888_vm7, %v2070_v2, %v2075_v21  ;;  %v1729_v31 = vsel %vm888_vm7, %v2075_v21, %v2070_v2  ;;  %v1726_v30 = vsel %vm888_vm7, %v2069_v33, %v2074_v41  ;;  %v1728_v0 = vsel %vm888_vm7, %v2074_v41, %v2069_v33 }
 0x1be   : > { %v1714_v24 = vmax.f32 %v1677_v1, %v1710_v61  ;;  %v1732_v40 = vmul.f32 %v1727_v16, %v2482_v17  ;;  %v1730_v6 = vmul.f32 %v1726_v30, %v2482_v17  ;;  %v1764_v52 = vsel %vm916_vm8, %v2080_v46, %v2085_v19  ;;  %1964 = vmatprep.mubr.msk.bf16.mxu0 %vm575_vm0, %v2091_v28 }
 0x1bf   : > { %v1766_v38 = vsel %vm916_vm8, %v2085_v19, %v2080_v46  ;;  %v2079_v51 = vunpack.i.l.bf16 %v2078_v27  ;;  %v1980_v1 = vadd.f32 -1.0, %v2477_v8  ;;  %v1707_v42 = vrot.slane %v2569_v25, %v2347_v45 }
 0x1c0   : > { %v1749_v62 = vadd.f32 %v1740_v18, %v1732_v40  ;;  %759 = vrot.lane.b32.xlu0 %v2536_v22, %s2112_s25  ;;  %v1747_v3 = vadd.f32 %v1740_v18, %v1730_v6  ;;  %v1696_v21 = vmul.f32 %v1692_v34, %v2472_v7  ;;  %v1694_v41 = vmul.f32 %v1691_v20, %v2472_v7 }
 0x1c1   : > { %757 = vrot.lane.b32.xlu1 %v2532_v43, %s2112_s25  ;;  %v1763_v54 = vsel %vm916_vm8, %v2079_v51, %v2084_v13  ;;  %v1765_v9 = vsel %vm916_vm8, %v2084_v13, %v2079_v51  ;;  %v1772_v53 = vmul.f32 3e+38, %v1980_v1  ;;  %v1744_v8 = vrot.slane %v1735_v26, %v2347_v45 }
 0x1c2   : > { %v1753_v63 = vmax.f32 %v1716_v14, %v1749_v62  ;;  %v1751_v36 = vmax.f32 %v1714_v24, %v1747_v3  ;;  %v1733_v2 = vmul.f32 %v1729_v31, %v2486_v10  ;;  %v1731_v33 = vmul.f32 %v1728_v0, %v2486_v10 }
 0x1c3   : > { %v1713_v25 = vadd.f32 %v1707_v42, %v1696_v21  ;;  %v1711_v34 = vadd.f32 %v1707_v42, %v1694_v41  ;;  %v1777_v20 = vrot.slane %v1772_v53, %v2345_v44  ;;  %v1769_v29 = vmul.f32 %v1764_v52, %v2497_v32 }
 0x1c4   : > { %787 = vrot.lane.b32.xlu0 %v2536_v22, %s2113_s26  ;;  %v1767_v26 = vmul.f32 %v1763_v54, %v2497_v32  ;;  %v1750_v61 = vadd.f32 %v1744_v8, %v1733_v2  ;;  %v1748_v14 = vadd.f32 %v1744_v8, %v1731_v33  ;;  %v1770_v18 = vmul.f32 %v1766_v38, %v2505_v35 }
 0x1c5   : > { %785 = vrot.lane.b32.xlu1 %v2532_v43, %s2113_s26  ;;  %v1768_v19 = vmul.f32 %v1765_v9, %v2505_v35  ;;  %v1715_v27 = vmax.f32 %v2723_v11, %v1711_v34  ;;  %v1786_v16 = vadd.f32 %v1777_v20, %v1769_v29 }
 0x1c6   : > { %v1784_v31 = vadd.f32 %v1777_v20, %v1767_v26 }
 0x1c7   : > { %v1752_v46 = vmax.f32 %v1715_v27, %v1748_v14  ;;  %v1790_v6 = vmax.f32 %v1753_v63, %v1786_v16 }
 0x1c8   : > { %830 = vrot.lane.b32.xlu0 %v2536_v22, %s2114_s27  ;;  %v1788_v0 = vmax.f32 %v1751_v36, %v1784_v31 }
 0x1c9   : > { %828 = vrot.lane.b32.xlu1 %v2532_v43, %s2114_s27 }
 0x1ca   : > { %v2799_v38 = vpack.c.bf16 %v1790_v6, %v1788_v0 }
 0x1cc   : > { %858 = vrot.lane.b32.xlu0 %v2536_v22, %s2115_s28 }
 0x1cd   : > { %856 = vrot.lane.b32.xlu1 %v2532_v43, %s2115_s28 }
 0x1d0   : > { %886 = vrot.lane.b32.xlu0 %v2536_v22, %s3230_s29 }
 0x1d1   : > { %884 = vrot.lane.b32.xlu1 %v2532_v43, %s3230_s29  ;;  %s3254_s29 = smov 112  }
 0x1d4   : > { %914 = vrot.lane.b32.xlu0 %v2536_v22, %s3246_s30  ;;  %v1717_v22 = vmax.f32 %v2714_v23, %v1713_v25 }
 0x1d5   : > { %912 = vrot.lane.b32.xlu1 %v2532_v43, %s3246_s30  ;;  %v1781_v43 = vrot.slane %v1772_v53, %v2347_v45 }
 0x1d6   : > { %v1754_v44 = vmax.f32 %v1717_v22, %v1750_v61 }
 0x1d7   : > { %v1785_v24 = vadd.f32 %v1781_v43, %v1768_v19  ;;  %v1787_v40 = vadd.f32 %v1781_v43, %v1770_v18 }
 0x1d9   : > { %v1789_v30 = vmax.f32 %v1752_v46, %v1785_v24  ;;  %v1791_v13 = vmax.f32 %v1754_v44, %v1787_v40 }
 0x1db   : > { %v2797_v52 = vpack.c.bf16 %v1791_v13, %v1789_v30 }
 0x20a   : > { %v698_v62 = vpop.permute.xlu0 %697  ;;  %v696_v11 = vpop.permute.xlu1 %695 }
 0x20e   : > { %v728_v3 = vpop.permute.xlu0 %727  ;;  %v726_v23 = vpop.permute.xlu1 %725 }
 0x212   : > { %v756_v51 = vpop.permute.xlu0 %755  ;;  %v754_v45 = vpop.permute.xlu1 %753 }
 0x216   : > { %v784_v54 = vpop.permute.xlu0 %783  ;;  %v782_v9 = vpop.permute.xlu1 %781 }
 0x21a   : > { %v2801_v1 = vpop.permute.xlu0 %826 }
 0x21b   : > { %v2803_v42 = vpop.permute.xlu1 %824 }
 0x21e   : > { %v2805_v21 = vpop.permute.xlu0 %854 }
 0x21f   : > { %v2807_v36 = vpop.permute.xlu1 %852 }
 0x222   : > { %v2809_v63 = vpop.permute.xlu0 %882 }
 0x223   : > { %v2811_v41 = vpop.permute.xlu1 %880 }
 0x226   : > { %v2813_v28 = vpop.permute.xlu0 %910 }
 0x227   : > { %v2815_v53 = vpop.permute.xlu1 %908 }
 0x22a   : > { %v702_v8 = vpop.permute.xlu0 %701 }
 0x22b   : > { %v700_v2 = vpop.permute.xlu1 %699  ;;  %v707_v33 = vsel %vm705_vm3, %v698_v62, %v702_v8  ;;  %v709_v25 = vsel %vm705_vm3, %v702_v8, %v698_v62 }
 0x22c   : > { %v706_v34 = vsel %vm705_vm3, %v696_v11, %v700_v2  ;;  %v708_v20 = vsel %vm705_vm3, %v700_v2, %v696_v11  ;;  %v723_v29 = vmul.f32 %v2386_v56, %v709_v25  ;;  %v724_v26 = vmul.f32 %v2390_v57, %v707_v33 }
 0x22d   : > { %v721_v61 = vmul.f32 %v2386_v56, %v708_v20  ;;  %v722_v14 = vmul.f32 %v2390_v57, %v706_v34 }
 0x22e   : > { %v732_v19 = vpop.permute.xlu0 %731 }
 0x22f   : > { %v936_v18 = vpack.c.bf16 %v723_v29, %v721_v61  ;;  %v730_v27 = vpop.permute.xlu1 %729  ;;  %v937_v22 = vpack.c.bf16 %v724_v26, %v722_v14  ;;  %v735_v43 = vsel %vm733_vm1, %v728_v3, %v732_v19  ;;  %v737_v16 = vsel %vm733_vm1, %v732_v19, %v728_v3 }
 0x230   : > { %v734_v31 = vsel %vm733_vm1, %v726_v23, %v730_v27  ;;  %v736_v46 = vsel %vm733_vm1, %v730_v27, %v726_v23  ;;  %v751_v44 = vmul.f32 %v2362_v48, %v737_v16  ;;  %v752_v24 = vmul.f32 %v2366_v49, %v735_v43 }
 0x231   : > { %v749_v40 = vmul.f32 %v2362_v48, %v736_v46  ;;  %v750_v30 = vmul.f32 %v2366_v49, %v734_v31  ;;  %1006 = vmatprep.subr.bf16.mxu0 %v937_v22 }
 0x232   : > { %1007 = vmatpush1.bf16.msra.mxu0 %v936_v18  ;;  %v760_v0 = vpop.permute.xlu0 %759 }
 0x233   : > { %v938_v13 = vpack.c.bf16 %v751_v44, %v749_v40  ;;  %v758_v6 = vpop.permute.xlu1 %757  ;;  %v939_v62 = vpack.c.bf16 %v752_v24, %v750_v30  ;;  %v763_v11 = vsel %vm761_vm2, %v756_v51, %v760_v0  ;;  %v765_v3 = vsel %vm761_vm2, %v760_v0, %v756_v51 }
 0x234   : > { %v762_v23 = vsel %vm761_vm2, %v754_v45, %v758_v6  ;;  %v764_v8 = vsel %vm761_vm2, %v758_v6, %v754_v45  ;;  %v779_v2 = vmul.f32 %v2430_v15, %v765_v3  ;;  %v780_v33 = vmul.f32 %v2399_v59, %v763_v11 }
 0x235   : > { %v777_v25 = vmul.f32 %v2430_v15, %v764_v8  ;;  %v778_v34 = vmul.f32 %v2399_v59, %v762_v23  ;;  %1008 = vmatprep.subr.bf16.mxu0 %v939_v62 }
 0x236   : > { %1009 = vmatpush1.bf16.msra.mxu0 %v938_v13  ;;  %v788_v29 = vpop.permute.xlu0 %787 }
 0x237   : > { %v940_v20 = vpack.c.bf16 %v779_v2, %v777_v25  ;;  %v786_v26 = vpop.permute.xlu1 %785  ;;  %v941_v51 = vpack.c.bf16 %v780_v33, %v778_v34  ;;  %v791_v61 = vsel %vm789_vm4, %v784_v54, %v788_v29  ;;  %v793_v45 = vsel %vm789_vm4, %v788_v29, %v784_v54 }
 0x238   : > { %v790_v14 = vsel %vm789_vm4, %v782_v9, %v786_v26  ;;  %v792_v18 = vsel %vm789_vm4, %v786_v26, %v782_v9  ;;  %v807_v19 = vmul.f32 %v2403_v60, %v793_v45  ;;  %v808_v27 = vmul.f32 %v2395_v58, %v791_v61 }
 0x239   : > { %v805_v22 = vmul.f32 %v2403_v60, %v792_v18  ;;  %v806_v43 = vmul.f32 %v2395_v58, %v790_v14  ;;  %1010 = vmatprep.subr.bf16.mxu0 %v941_v51  ;;  %v3248_v33 = vpack.c.bf16 %v2565_v12, %v2556_v50 }
 0x23a   : > { %1011 = vmatpush1.bf16.msra.mxu0 %v940_v20  ;;  %v831_v31 = vpop.permute.xlu0 %830 }
 0x23b   : > { %v942_v16 = vpack.c.bf16 %v807_v19, %v805_v22  ;;  %v829_v46 = vpop.permute.xlu1 %828  ;;  %v943_v54 = vpack.c.bf16 %v808_v27, %v806_v43  ;;  %v834_v44 = vsel %vm832_vm5, %v2801_v1, %v831_v31  ;;  %v836_v9 = vsel %vm832_vm5, %v831_v31, %v2801_v1 }
 0x23c   : > { %v833_v24 = vsel %vm832_vm5, %v2803_v42, %v829_v46  ;;  %v835_v40 = vsel %vm832_vm5, %v829_v46, %v2803_v42  ;;  %v851_v30 = vmul.f32 %v2413_v5, %v836_v9  ;;  %v850_v0 = vmul.f32 %v2441_v37, %v834_v44 }
 0x23d   : > { %v849_v13 = vmul.f32 %v2413_v5, %v835_v40  ;;  %1012 = vmatprep.subr.bf16.mxu0 %v943_v54  ;;  %v848_v6 = vmul.f32 %v2441_v37, %v833_v24  ;;  %v3247_v1 = vpack.c.bf16 %v2552_v55, %v2548_v47 }
 0x23e   : > { %1013 = vmatpush1.bf16.msra.mxu0 %v942_v16  ;;  %v859_v62 = vpop.permute.xlu0 %858 }
 0x23f   : > { %1014 = vmatprep.subr.bf16.mxu0 %v3247_v1  ;;  %v857_v11 = vpop.permute.xlu1 %856  ;;  %v862_v42 = vsel %vm860_vm6, %v2805_v21, %v859_v62  ;;  %v864_v3 = vsel %vm860_vm6, %v859_v62, %v2805_v21  ;;  %v947_v2 = vpack.c.bf16 %v851_v30, %v849_v13  ;;  %v946_v29 = vpack.c.bf16 %v850_v0, %v848_v6  ;;  %v2096_v13 = vld [vmem:[%s3206_s6 + $0x10] ss:$8 sps:$4 sm:$0xff]  }
 0x240   : > { %v861_v23 = vsel %vm860_vm6, %v2807_v36, %v857_v11  ;;  %v863_v8 = vsel %vm860_vm6, %v857_v11, %v2807_v36  ;;  %v879_v47 = vmul.f32 %v2472_v7, %v864_v3  ;;  %v878_v25 = vmul.f32 %v2468_v4, %v862_v42  ;;  %v3250_v62 = vld [vmem:[#allocation9_spill] sm:$0xff] }
 0x241   : > { %v877_v55 = vmul.f32 %v2472_v7, %v863_v8  ;;  %v876_v21 = vmul.f32 %v2468_v4, %v861_v23  ;;  %v3249_v0 = vmov 0  }
 0x242   : > { %1015 = vmatpush1.bf16.msra.mxu0 %v3248_v33  ;;  %v887_v34 = vpop.permute.xlu0 %886 }
 0x243   : > { %1016 = vmatprep.subr.bf16.mxu0 %v947_v2  ;;  %v885_v20 = vpop.permute.xlu1 %884  ;;  %v890_v36 = vsel %vm888_vm7, %v2809_v63, %v887_v34  ;;  %v892_v26 = vsel %vm888_vm7, %v887_v34, %v2809_v63  ;;  %v949_v45 = vpack.c.bf16 %v879_v47, %v877_v55  ;;  %v948_v14 = vpack.c.bf16 %v878_v25, %v876_v21  ;;  %v3252_v21 = vld [vmem:[#allocation7_spill] sm:$0xff] }
 0x244   : > { %v891_v50 = vsel %vm888_vm7, %v885_v20, %v2811_v41  ;;  %v907_v12 = vmul.f32 %v2486_v10, %v892_v26  ;;  %v889_v51 = vsel %vm888_vm7, %v2811_v41, %v885_v20  ;;  %v906_v18 = vmul.f32 %v2482_v17, %v890_v36 }
 0x245   : > { %v905_v61 = vmul.f32 %v2486_v10, %v891_v50  ;;  %v904_v27 = vmul.f32 %v2482_v17, %v889_v51  ;;  %v2098_v51 = vld [vmem:[%s3212_s12 + $0x4] ss:$8 sps:$4 sm:$0xff]  }
 0x246   : > { %1017 = vmatpush1.bf16.msra.mxu0 %v946_v29  ;;  %v915_v19 = vpop.permute.xlu0 %914  ;;  %v3253_v29 = vld [vmem:[#allocation6_spill] sm:$0xff]  ;;  %1972 = vmatprep.mubr.msk.bf16.mxu1 %vm575_vm0, %v2098_v51 }
 0x247   : > { %1018 = vmatprep.subr.bf16.mxu0 %v949_v45  ;;  %v913_v63 = vpop.permute.xlu1 %912  ;;  %v920_v22 = vsel %vm916_vm8, %v915_v19, %v2813_v28  ;;  %v951_v43 = vpack.c.bf16 %v907_v12, %v905_v61  ;;  %v918_v16 = vsel %vm916_vm8, %v2813_v28, %v915_v19  ;;  %v950_v44 = vpack.c.bf16 %v906_v18, %v904_v27  ;;  %v2093_v28 = vld [vmem:[%s3206_s6] ss:$8 sps:$4 sm:$0xff]   ;;  %v960_v19 = vld [vmem:[%s3207_s7 + $0x10] sm:$0xff] }
 0x248   : > { %v919_v41 = vsel %vm916_vm8, %v913_v63, %v2815_v53  ;;  %v935_v31 = vmul.f32 %v2505_v35, %v920_v22  ;;  %v917_v46 = vsel %vm916_vm8, %v2815_v53, %v913_v63  ;;  %v934_v9 = vmul.f32 %v2497_v32, %v918_v16  ;;  %v2094_v53 = vld [vmem:[%s3206_s6 + $0x14] ss:$8 sps:$4 sm:$0xff]   ;;  %v548_v61 = vld [vmem:[%s3203_s3] sm:$0xff]  ;;  %v549_v45 = vld [vmem:[%s3203_s3 + $0x8] sm:$0xff] }
 0x249   : > { %v933_v54 = vmul.f32 %v2505_v35, %v919_v41  ;;  %v932_v24 = vmul.f32 %v2497_v32, %v917_v46  ;;  %v959_v18 = vld [vmem:[%s3207_s7 + $0x8] sm:$0xff]  ;;  %v961_v63 = vld [vmem:[%s3207_s7 + $0x18] sm:$0xff]  ;;  %v1425_v27 = vld [vmem:[%s3213_s13] sm:$0xff] }
 0x24a   : > { %1019 = vmatpush1.bf16.msra.mxu0 %v948_v14  ;;  %v958_v14 = vld [vmem:[%s3207_s7] sm:$0xff]  ;;  %v1426_v22 = vld [vmem:[%s3213_s13 + $0x8] sm:$0xff] }
 0x24b   : > { %1020 = vmatprep.subr.bf16.mxu0 %v951_v43  ;;  %v953_v40 = vpack.c.bf16 %v935_v31, %v933_v54  ;;  %v952_v30 = vpack.c.bf16 %v934_v9, %v932_v24  ;;  %v1796_v41 = vld [vmem:[%s3215_s15] sm:$0xff]  ;;  %v1797_v43 = vld [vmem:[%s3215_s15 + $0x8] sm:$0xff] }
 0x24e   : > { %1021 = vmatpush1.bf16.msra.mxu0 %v950_v44 }
 0x24f   : > { %1022 = vmatprep.subr.bf16.mxu0 %v953_v40 }
 0x252   : > { %1023 = vmatpush1.bf16.msra.mxu0 %v952_v30 }
 0x253   : > { %1816 = vmatprep.subr.bf16.mxu0 %v2797_v52  ;;  %v2097_v52 = vld [vmem:[%s3214_s14] sm:$0xff]  }
 0x255   : > { %1039 = vmatmul.mubr.bf16.vlgmr.msra.gmra.mrb[8].mxu0 %v2093_v28 }
 0x256   : > { %1965 = vmatprep.mubr.msk.bf16.mxu0 %vm575_vm0, %v2094_v53  ;;  %1817 = vmatpush1.bf16.msra.mxu0 %v2799_v38  ;;  %v3251_v38 = vld [vmem:[#allocation8_spill] sm:$0xff] }
 0x25d   : > { %1049 = vmatmul.mubr.bf16.gmra.mrb[12].mxu0 %v2096_v13 }
 0x25e   : > { %1848 = vmatprep.mubr.bf16.mxu0 %v3249_v0 }
 0x25f   : > { %v1260_v6 = vpop.f32.mrb[4].mxu1 }
 0x260   : > { %v1261_v1 = vadd.f32 %v1260_v6, %v3250_v62  ;;  %v1262_v11 = vpop.f32.mrb[5].mxu1 }
 0x261   : > { %v1263_v42 = vadd.f32 %v1262_v11, %v3250_v62  ;;  %v1264_v3 = vpop.f32.mrb[6].mxu1 }
 0x262   : > { %v1269_v23 = vmax.f32 %v1261_v1, 0.0  ;;  %v1265_v8 = vadd.f32 %v1264_v3, %v3251_v38  ;;  %v1266_v47 = vpop.f32.mrb[7].mxu1 }
 0x263   : > { %v1270_v55 = vmax.f32 %v1263_v42, 0.0  ;;  %v1267_v2 = vadd.f32 %v1266_v47, %v3251_v38 }
 0x264   : > { %v1271_v33 = vmax.f32 %v1265_v8, 0.0  ;;  %1273 = vrot.lane.b32.xlu1 %v1269_v23, %s2111_s24  ;;  %v2959_v34 = vmul.f32 %v1269_v23, %v3252_v21 }
 0x265   : > { %1982 = vmatmul.mubr.msk.bf16.vlgmr.msra.gmra.mrb[16].mxu0 %vm575_vm0, %v2097_v52  ;;  %v1272_v25 = vmax.f32 %v1267_v2, 0.0  ;;  %v2965_v36 = vmul.f32 %v1270_v55, %v3253_v29 }
 0x266   : > { %1275 = vrot.lane.b32.xlu0 %v1271_v33, %s2111_s24  ;;  %v2962_v20 = vmul.f32 %v1271_v33, %v3252_v21 }
 0x267   : > { %v2968_v26 = vmul.f32 %v1272_v25, %v3253_v29 }
 0x268   : > { %1289 = vrot.lane.b32.xlu1 %v1269_v23, %s2110_s23  ;;  %v1413_v50 = vpack.c.bf16 %v2962_v20, %v2959_v34 }
 0x269   : > { %v1414_v12 = vpack.c.bf16 %v2968_v26, %v2965_v36 }
 0x26a   : > { %1291 = vrot.lane.b32.xlu0 %v1271_v33, %s2110_s23 }
 0x26c   : > { %1305 = vrot.lane.b32.xlu1 %v1269_v23, %s2112_s25 }
 0x26e   : > { %1307 = vrot.lane.b32.xlu0 %v1271_v33, %s2112_s25 }
 0x270   : > { %1321 = vrot.lane.b32.xlu1 %v1269_v23, %s2113_s26 }
 0x272   : > { %1323 = vrot.lane.b32.xlu0 %v1271_v33, %s2113_s26 }
 0x274   : > { %1341 = vrot.lane.b32.xlu1 %v1269_v23, %s2114_s27 }
 0x276   : > { %1343 = vrot.lane.b32.xlu0 %v1271_v33, %s2114_s27 }
 0x278   : > { %1357 = vrot.lane.b32.xlu1 %v1269_v23, %s2115_s28 }
 0x27a   : > { %1359 = vrot.lane.b32.xlu0 %v1271_v33, %s2115_s28 }
 0x27c   : > { %1373 = vrot.lane.b32.xlu1 %v1269_v23, %s3254_s29 }
 0x27e   : > { %1375 = vrot.lane.b32.xlu0 %v1271_v33, %s3254_s29 }
 0x280   : > { %1277 = vrot.lane.b32.xlu1 %v1270_v55, %s2111_s24 }
 0x282   : > { %1279 = vrot.lane.b32.xlu0 %v1272_v25, %s2111_s24 }
 0x284   : > { %1293 = vrot.lane.b32.xlu1 %v1270_v55, %s2110_s23 }
 0x286   : > { %1295 = vrot.lane.b32.xlu0 %v1272_v25, %s2110_s23 }
 0x288   : > { %1309 = vrot.lane.b32.xlu1 %v1270_v55, %s2112_s25 }
 0x28a   : > { %1311 = vrot.lane.b32.xlu0 %v1272_v25, %s2112_s25 }
 0x28c   : > { %1325 = vrot.lane.b32.xlu1 %v1270_v55, %s2113_s26 }
 0x28e   : > { %1327 = vrot.lane.b32.xlu0 %v1272_v25, %s2113_s26 }
 0x290   : > { %1389 = vrot.lane.b32.xlu1 %v1269_v23, %s3246_s30 }
 0x292   : > { %1391 = vrot.lane.b32.xlu0 %v1271_v33, %s3246_s30 }
 0x294   : > { %1345 = vrot.lane.b32.xlu1 %v1270_v55, %s2114_s27 }
 0x296   : > { %1347 = vrot.lane.b32.xlu0 %v1272_v25, %s2114_s27 }
 0x298   : > { %1361 = vrot.lane.b32.xlu1 %v1270_v55, %s2115_s28 }
 0x29a   : > { %1363 = vrot.lane.b32.xlu0 %v1272_v25, %s2115_s28 }
 0x29c   : > { %1377 = vrot.lane.b32.xlu1 %v1270_v55, %s3254_s29 }
 0x29e   : > { %1379 = vrot.lane.b32.xlu0 %v1272_v25, %s3254_s29  ;;  %s1986_s29 = smul.u32 160, %s3260_s22 }
 0x2a0   : > { %1393 = vrot.lane.b32.xlu1 %v1270_v55, %s3246_s30  ;;  %s3173_s24 = scalar_lea.vmem %s3216_s16, %s1986_s29 }
 0x2a2   : > { %1395 = vrot.lane.b32.xlu0 %v1272_v25, %s3246_s30 }
 0x2a4   : > { %552 = vperm.xlu1 %2005, %v548_v61  }
 0x2a6   : > { %557 = vperm.xlu0 %2004, %v549_v45  }
 0x2a8   : > { %964 = vperm.xlu1 %2005, %v958_v14  }
 0x2aa   : > { %969 = vperm.xlu0 %2004, %v959_v18  }
 0x2ac   : > { %974 = vperm.xlu1 %2005, %v960_v19  }
 0x2ae   : > { %979 = vperm.xlu0 %2004, %v961_v63  }
 0x2b0   : > { %1429 = vperm.xlu1 %2005, %v1425_v27  }
 0x2b2   : > { %1434 = vperm.xlu0 %2004, %v1426_v22  }
 0x2b4   : > { %1800 = vperm.xlu1 %2005, %v1796_v41  }
 0x2b6   : > { %1805 = vperm.xlu0 %2004, %v1797_v43  }
 0x2d6   : > { %v1274_v16 = vpop.permute.xlu1 %1273 }
 0x2d8   : > { %v1276_v31 = vpop.permute.xlu0 %1275 }
 0x2da   : > { %v1290_v46 = vpop.permute.xlu1 %1289 }
 0x2dc   : > { %v1292_v54 = vpop.permute.xlu0 %1291 }
 0x2de   : > { %v1306_v44 = vpop.permute.xlu1 %1305 }
 0x2e0   : > { %v1308_v9 = vpop.permute.xlu0 %1307 }
 0x2e2   : > { %v1322_v24 = vpop.permute.xlu1 %1321 }
 0x2e4   : > { %v1324_v40 = vpop.permute.xlu0 %1323 }
 0x2e6   : > { %v3038_v30 = vpop.permute.xlu1 %1341 }
 0x2e8   : > { %v3040_v28 = vpop.permute.xlu0 %1343 }
 0x2ea   : > { %v3042_v53 = vpop.permute.xlu1 %1357 }
 0x2ec   : > { %v3044_v13 = vpop.permute.xlu0 %1359 }
 0x2ee   : > { %v3046_v0 = vpop.permute.xlu1 %1373 }
 0x2f0   : > { %v3048_v6 = vpop.permute.xlu0 %1375 }
 0x2f2   : > { %v1278_v62 = vpop.permute.xlu1 %1277 }
 0x2f3   : > { %v1281_v1 = vsel %vm705_vm3, %v1274_v16, %v1278_v62  ;;  %v1283_v11 = vsel %vm705_vm3, %v1278_v62, %v1274_v16 }
 0x2f4   : > { %v1280_v52 = vpop.permute.xlu0 %1279  ;;  %v1285_v23 = vmul.f32 %v1283_v11, %v2386_v56  ;;  %v1286_v38 = vmul.f32 %v1281_v1, %v2390_v57 }
 0x2f5   : > { %v1282_v42 = vsel %vm705_vm3, %v1276_v31, %v1280_v52  ;;  %v1284_v3 = vsel %vm705_vm3, %v1280_v52, %v1276_v31 }
 0x2f6   : > { %v1287_v8 = vmul.f32 %v1284_v3, %v2386_v56  ;;  %v1288_v47 = vmul.f32 %v1282_v42, %v2390_v57  ;;  %v1294_v55 = vpop.permute.xlu1 %1293 }
 0x2f7   : > { %v1297_v2 = vsel %vm733_vm1, %v1290_v46, %v1294_v55  ;;  %v1299_v33 = vsel %vm733_vm1, %v1294_v55, %v1290_v46 }
 0x2f8   : > { %v1405_v25 = vpack.c.bf16 %v1287_v8, %v1285_v23  ;;  %v1296_v21 = vpop.permute.xlu0 %1295  ;;  %v1406_v29 = vpack.c.bf16 %v1288_v47, %v1286_v38  ;;  %v1301_v56 = vmul.f32 %v1299_v33, %v2362_v48  ;;  %v1302_v57 = vmul.f32 %v1297_v2, %v2366_v49 }
 0x2f9   : > { %v1298_v51 = vsel %vm733_vm1, %v1292_v54, %v1296_v21  ;;  %v1300_v61 = vsel %vm733_vm1, %v1296_v21, %v1292_v54 }
 0x2fa   : > { %v1303_v45 = vmul.f32 %v1300_v61, %v2362_v48  ;;  %v1304_v14 = vmul.f32 %v1298_v51, %v2366_v49  ;;  %1449 = vmatprep.subr.bf16.mxu1 %v1406_v29  ;;  %v1310_v18 = vpop.permute.xlu1 %1309 }
 0x2fb   : > { %v1313_v19 = vsel %vm761_vm2, %v1306_v44, %v1310_v18  ;;  %v1315_v63 = vsel %vm761_vm2, %v1310_v18, %v1306_v44  ;;  %1450 = vmatpush1.bf16.msra.mxu1 %v1405_v25 }
 0x2fc   : > { %v1407_v27 = vpack.c.bf16 %v1303_v45, %v1301_v56  ;;  %v1312_v22 = vpop.permute.xlu0 %1311  ;;  %v1408_v41 = vpack.c.bf16 %v1304_v14, %v1302_v57  ;;  %v1317_v49 = vmul.f32 %v1315_v63, %v2430_v15  ;;  %v1318_v16 = vmul.f32 %v1313_v19, %v2399_v59 }
 0x2fd   : > { %v1314_v43 = vsel %vm761_vm2, %v1308_v9, %v1312_v22  ;;  %v1316_v48 = vsel %vm761_vm2, %v1312_v22, %v1308_v9 }
 0x2fe   : > { %v1319_v31 = vmul.f32 %v1316_v48, %v2430_v15  ;;  %v1320_v46 = vmul.f32 %v1314_v43, %v2399_v59  ;;  %1451 = vmatprep.subr.bf16.mxu1 %v1408_v41  ;;  %v1326_v54 = vpop.permute.xlu1 %1325 }
 0x2ff   : > { %v1329_v44 = vsel %vm789_vm4, %v1322_v24, %v1326_v54  ;;  %v1331_v62 = vsel %vm789_vm4, %v1326_v54, %v1322_v24  ;;  %1452 = vmatpush1.bf16.msra.mxu1 %v1407_v27 }
 0x300   : > { %v1409_v1 = vpack.c.bf16 %v1319_v31, %v1317_v49  ;;  %v1328_v11 = vpop.permute.xlu0 %1327  ;;  %v1410_v9 = vpack.c.bf16 %v1320_v46, %v1318_v16  ;;  %v1333_v59 = vmul.f32 %v1331_v62, %v2403_v60  ;;  %v1334_v42 = vmul.f32 %v1329_v44, %v2395_v58 }
 0x301   : > { %v1330_v52 = vsel %vm789_vm4, %v1324_v40, %v1328_v11  ;;  %v1332_v15 = vsel %vm789_vm4, %v1328_v11, %v1324_v40  ;;  %v3255_v11 = vld [vmem:[#allocation2_spill] sm:$0xff] }
 0x302   : > { %v1335_v3 = vmul.f32 %v1332_v15, %v2403_v60  ;;  %v1336_v23 = vmul.f32 %v1330_v52, %v2395_v58  ;;  %1453 = vmatprep.subr.bf16.mxu1 %v1410_v9  ;;  %v1390_v24 = vpop.permute.xlu1 %1389  ;;  %v3256_v52 = vld [vmem:[#allocation3_spill] sm:$0xff] }
 0x303   : > { %1454 = vmatpush1.bf16.msra.mxu1 %v1409_v1  ;;  %v2100_v1 = vld [vmem:[%s3212_s12] ss:$8 sps:$4 sm:$0xff]  }
 0x304   : > { %v1411_v38 = vpack.c.bf16 %v1335_v3, %v1333_v59  ;;  %v1392_v8 = vpop.permute.xlu0 %1391  ;;  %v1412_v47 = vpack.c.bf16 %v1336_v23, %v1334_v42  ;;  %v3257_v42 = vld [vmem:[#allocation4_spill] sm:$0xff]  ;;  %v3258_v23 = vld [vmem:[#allocation5_spill] sm:$0xff] }
 0x306   : > { %1455 = vmatprep.subr.bf16.mxu1 %v1412_v47  ;;  %v1346_v55 = vpop.permute.xlu1 %1345 }
 0x307   : > { %v1349_v40 = vsel %vm832_vm5, %v3038_v30, %v1346_v55  ;;  %v1351_v2 = vsel %vm832_vm5, %v1346_v55, %v3038_v30  ;;  %1456 = vmatpush1.bf16.msra.mxu1 %v1411_v38 }
 0x308   : > { %v1348_v60 = vpop.permute.xlu0 %1347  ;;  %1457 = vmatprep.subr.bf16.mxu1 %v1414_v12  ;;  %v1353_v25 = vmul.f32 %v1349_v40, %v2441_v37  ;;  %v1354_v21 = vmul.f32 %v1351_v2, %v2413_v5 }
 0x309   : > { %v1350_v58 = vsel %vm832_vm5, %v3040_v28, %v1348_v60  ;;  %v1352_v33 = vsel %vm832_vm5, %v1348_v60, %v3040_v28 }
 0x30a   : > { %v1355_v30 = vmul.f32 %v1350_v58, %v2441_v37  ;;  %v1356_v29 = vmul.f32 %v1352_v33, %v2413_v5  ;;  %v1362_v51 = vpop.permute.xlu1 %1361 }
 0x30b   : > { %v1365_v36 = vsel %vm860_vm6, %v3042_v53, %v1362_v51  ;;  %v1367_v26 = vsel %vm860_vm6, %v1362_v51, %v3042_v53  ;;  %1458 = vmatpush1.bf16.msra.mxu1 %v1413_v50 }
 0x30c   : > { %v1415_v12 = vpack.c.bf16 %v1355_v30, %v1353_v25  ;;  %v1364_v28 = vpop.permute.xlu0 %1363  ;;  %v1416_v61 = vpack.c.bf16 %v1356_v29, %v1354_v21  ;;  %v1369_v56 = vmul.f32 %v1365_v36, %v2468_v4  ;;  %v1370_v57 = vmul.f32 %v1367_v26, %v2472_v7 }
 0x30d   : > { %v1366_v5 = vsel %vm860_vm6, %v3044_v13, %v1364_v28  ;;  %v1368_v37 = vsel %vm860_vm6, %v1364_v28, %v3044_v13 }
 0x30e   : > { %v1371_v53 = vmul.f32 %v1366_v5, %v2468_v4  ;;  %v1372_v34 = vmul.f32 %v1368_v37, %v2472_v7  ;;  %1459 = vmatprep.subr.bf16.mxu1 %v1416_v61  ;;  %v1378_v20 = vpop.permute.xlu1 %1377 }
 0x30f   : > { %v1381_v50 = vsel %vm888_vm7, %v3046_v0, %v1378_v20  ;;  %v1383_v45 = vsel %vm888_vm7, %v1378_v20, %v3046_v0  ;;  %1460 = vmatpush1.bf16.msra.mxu1 %v1415_v12 }
 0x310   : > { %v1417_v13 = vpack.c.bf16 %v1371_v53, %v1369_v56  ;;  %v1380_v14 = vpop.permute.xlu0 %1379  ;;  %v1418_v18 = vpack.c.bf16 %v1372_v34, %v1370_v57  ;;  %v1385_v19 = vmul.f32 %v1381_v50, %v2482_v17  ;;  %v1386_v63 = vmul.f32 %v1383_v45, %v2486_v10 }
 0x311   : > { %v1382_v4 = vsel %vm888_vm7, %v3048_v6, %v1380_v14  ;;  %v1384_v7 = vsel %vm888_vm7, %v1380_v14, %v3048_v6 }
 0x312   : > { %v1387_v27 = vmul.f32 %v1382_v4, %v2482_v17  ;;  %v1388_v0 = vmul.f32 %v1384_v7, %v2486_v10  ;;  %1461 = vmatprep.subr.bf16.mxu1 %v1418_v18  ;;  %v1394_v22 = vpop.permute.xlu1 %1393 }
 0x313   : > { %v1397_v41 = vsel %vm916_vm8, %v1390_v24, %v1394_v22  ;;  %v1399_v43 = vsel %vm916_vm8, %v1394_v22, %v1390_v24  ;;  %1462 = vmatpush1.bf16.msra.mxu1 %v1417_v13 }
 0x314   : > { %v1419_v48 = vpack.c.bf16 %v1387_v27, %v1385_v19  ;;  %v1396_v49 = vpop.permute.xlu0 %1395  ;;  %v1420_v6 = vpack.c.bf16 %v1388_v0, %v1386_v63  ;;  %v1401_v10 = vmul.f32 %v1397_v41, %v2497_v32  ;;  %v1402_v31 = vmul.f32 %v1399_v43, %v2505_v35 }
 0x315   : > { %v1398_v16 = vsel %vm916_vm8, %v1392_v8, %v1396_v49  ;;  %v1400_v17 = vsel %vm916_vm8, %v1396_v49, %v1392_v8 }
 0x316   : > { %v1403_v46 = vmul.f32 %v1398_v16, %v2497_v32  ;;  %v1404_v54 = vmul.f32 %v1400_v17, %v2505_v35  ;;  %1463 = vmatprep.subr.bf16.mxu1 %v1420_v6 }
 0x317   : > { %1464 = vmatpush1.bf16.msra.mxu1 %v1419_v48 }
 0x318   : > { %v1421_v44 = vpack.c.bf16 %v1403_v46, %v1401_v10  ;;  %v1422_v62 = vpack.c.bf16 %v1404_v54, %v1402_v31 }
 0x31a   : > { %1465 = vmatprep.subr.bf16.mxu1 %v1422_v62 }
 0x31b   : > { %1466 = vmatpush1.bf16.msra.mxu1 %v1421_v44 }
 0x31e   : > { %1482 = vmatmul.mubr.bf16.vlgmr.msra.gmra.mrb[8].mxu1 %v2100_v1 }
 0x323   : > { %v553_v39 = vpop.permute.xlu1 %552 }
 0x324   : > { %v614_v9 = vadd.f32 %v3255_v11, %v553_v39  ;;  %v616_v15 = vadd.f32 %v3256_v52, %v553_v39 }
 0x325   : > { %v558_v32 = vpop.permute.xlu0 %557 }
 0x326   : > { %v622_v35 = vmax.f32 %v614_v9, 0.0  ;;  %v623_v59 = vmax.f32 %v616_v15, 0.0  ;;  %v618_v3 = vadd.f32 %v3257_v42, %v558_v32  ;;  %v620_v24 = vadd.f32 %v3258_v23, %v558_v32 }
 0x327   : > { %v965_v8 = vpop.permute.xlu1 %964 }
 0x328   : > { %v1040_v38 = vpop.f32.mrb[8].mxu0  ;;  %1863 = vst [vmem:[%s3173_s24] sm:$0xff] %v622_v35  ;;  %1864 = vst [vmem:[%s3173_s24 + $0x8] sm:$0xff] %v623_v59  ;;  %v624_v47 = vmax.f32 %v618_v3, 0.0  ;;  %v625_v55 = vmax.f32 %v620_v24, 0.0 }
 0x329   : > { %v1041_v40 = vadd.f32 %v1040_v38, %v965_v8  ;;  %v1042_v2 = vpop.f32.mrb[9].mxu0  ;;  %v970_v58 = vpop.permute.xlu0 %969 }
 0x32a   : > { %v1043_v60 = vadd.f32 %v1042_v2, %v965_v8  ;;  %v1044_v33 = vpop.f32.mrb[10].mxu0  ;;  %1865 = vst [vmem:[%s3173_s24 + $0x10] sm:$0xff] %v624_v47  ;;  %1866 = vst [vmem:[%s3173_s24 + $0x18] sm:$0xff] %v625_v55 }
 0x32b   : > { %v1059_v25 = vmax.f32 %v1041_v40, 0.0  ;;  %v1045_v21 = vadd.f32 %v1044_v33, %v970_v58  ;;  %v1046_v30 = vpop.f32.mrb[11].mxu0  ;;  %v975_v36 = vpop.permute.xlu1 %974 }
 0x32c   : > { %v1060_v29 = vmax.f32 %v1043_v60, 0.0  ;;  %v1047_v51 = vadd.f32 %v1046_v30, %v970_v58 }
 0x32d   : > { %1867 = vst [vmem:[%s3173_s24 + $0x20] sm:$0xff] %v1059_v25  ;;  %v1061_v26 = vmax.f32 %v1045_v21, 0.0  ;;  %v980_v28 = vpop.permute.xlu0 %979 }
 0x32e   : > { %1868 = vst [vmem:[%s3173_s24 + $0x28] sm:$0xff] %v1060_v29  ;;  %v1062_v12 = vmax.f32 %v1047_v51, 0.0 }
 0x32f   : > { %1869 = vst [vmem:[%s3173_s24 + $0x30] sm:$0xff] %v1061_v26  ;;  %v1430_v56 = vpop.permute.xlu1 %1429 }
 0x330   : > { %1870 = vst [vmem:[%s3173_s24 + $0x38] sm:$0xff] %v1062_v12  ;;  %v1050_v61 = vpop.f32.mrb[12].mxu0 }
 0x331   : > { %v1051_v5 = vadd.f32 %v1050_v61, %v975_v36  ;;  %v1052_v37 = vpop.f32.mrb[13].mxu0  ;;  %v1435_v13 = vpop.permute.xlu0 %1434 }
 0x332   : > { %v1053_v57 = vadd.f32 %v1052_v37, %v975_v36  ;;  %v1054_v53 = vpop.f32.mrb[14].mxu0 }
 0x333   : > { %v1063_v34 = vmax.f32 %v1051_v5, 0.0  ;;  %v1055_v20 = vadd.f32 %v1054_v53, %v980_v28  ;;  %v1056_v50 = vpop.f32.mrb[15].mxu0  ;;  %v1801_v7 = vpop.permute.xlu1 %1800 }
 0x334   : > { %v1064_v45 = vmax.f32 %v1053_v57, 0.0  ;;  %v1057_v14 = vadd.f32 %v1056_v50, %v980_v28 }
 0x335   : > { %1871 = vst [vmem:[%s3173_s24 + $0x40] sm:$0xff] %v1063_v34  ;;  %v1065_v18 = vmax.f32 %v1055_v20, 0.0  ;;  %v1806_v0 = vpop.permute.xlu0 %1805 }
 0x336   : > { %1872 = vst [vmem:[%s3173_s24 + $0x48] sm:$0xff] %v1064_v45  ;;  %v1066_v4 = vmax.f32 %v1057_v14, 0.0 }
 0x337   : > { %1873 = vst [vmem:[%s3173_s24 + $0x50] sm:$0xff] %v1065_v18 }
 0x338   : > { %1874 = vst [vmem:[%s3173_s24 + $0x58] sm:$0xff] %v1066_v4  ;;  %v1850_v19 = vpop.f32.mrb[16].mxu0 }
 0x339   : > { %v1851_v63 = vadd.f32 %v1850_v19, %v1801_v7  ;;  %v1852_v27 = vpop.f32.mrb[17].mxu0 }
 0x33a   : > { %v1853_v22 = vadd.f32 %v1852_v27, %v1801_v7  ;;  %v1854_v41 = vpop.f32.mrb[18].mxu0 }
 0x33b   : > { %v1859_v43 = vmax.f32 %v1851_v63, 0.0  ;;  %v1855_v48 = vadd.f32 %v1854_v41, %v1806_v0  ;;  %v1856_v49 = vpop.f32.mrb[19].mxu0 }
 0x33c   : > { %v1860_v6 = vmax.f32 %v1853_v22, 0.0  ;;  %v1857_v16 = vadd.f32 %v1856_v49, %v1806_v0 }
 0x33d   : > { %1879 = vst [vmem:[%s3173_s24 + $0x80] sm:$0xff] %v1859_v43  ;;  %v1861_v17 = vmax.f32 %v1855_v48, 0.0 }
 0x33e   : > { %1880 = vst [vmem:[%s3173_s24 + $0x88] sm:$0xff] %v1860_v6  ;;  %v1862_v10 = vmax.f32 %v1857_v16, 0.0 }
 0x33f   : > { %1881 = vst [vmem:[%s3173_s24 + $0x90] sm:$0xff] %v1861_v17 }
 0x340   : > { %1882 = vst [vmem:[%s3173_s24 + $0x98] sm:$0xff] %v1862_v10 }
 0x3f1   : > { %v1483_v31 = vpop.f32.mrb[8].mxu1 }
 0x3f2   : > { %v1484_v46 = vadd.f32 %v1483_v31, %v1430_v56  ;;  %v1485_v54 = vpop.f32.mrb[9].mxu1 }
 0x3f3   : > { %v1486_v44 = vadd.f32 %v1485_v54, %v1430_v56  ;;  %v1487_v62 = vpop.f32.mrb[10].mxu1 }
 0x3f4   : > { %v1492_v1 = vmax.f32 %v1484_v46, 0.0  ;;  %v1488_v39 = vadd.f32 %v1487_v62, %v1435_v13  ;;  %v1489_v11 = vpop.f32.mrb[11].mxu1 }
 0x3f5   : > { %v1493_v9 = vmax.f32 %v1486_v44, 0.0  ;;  %v1490_v52 = vadd.f32 %v1489_v11, %v1435_v13 }
 0x3f6   : > { %1875 = vst [vmem:[%s3173_s24 + $0x60] sm:$0xff] %v1492_v1  ;;  %v1494_v15 = vmax.f32 %v1488_v39, 0.0 }
 0x3f7   : > { %1876 = vst [vmem:[%s3173_s24 + $0x68] sm:$0xff] %v1493_v9  ;;  %v1495_v32 = vmax.f32 %v1490_v52, 0.0 }
 0x3f8   : > { %1877 = vst [vmem:[%s3173_s24 + $0x70] sm:$0xff] %v1494_v15 }
 0x3f9   : > { %1878 = vst [vmem:[%s3173_s24 + $0x78] sm:$0xff] %v1495_v32 }
 0x3fa PF: > { %s26_s21 = sadd.s32 1, %s2107_s21  }
 0x3fb   : > { %p23_p4 = scmp.ge.s32.totalorder %s26_s21, 4  }
 0x3fd   :  { %25 = sbr.rel (!%p23_p4) target bundleno = 2 (0x2), region = 122 }

</bundles_post_ra>
